<compile_context>
chip_gen: v5e
topology: v5e:2x2
jax: 0.10.0
libtpu: 0.0.40
codegen_flags: <defaults>
</compile_context>

<pallas_src>
import jax
import jax.numpy as jnp
from jax.experimental import pallas as pl

# ----------------------------- model config ---------------------------------
VOCAB = 100
VOCAB_PAD = 128  # vocab padded to one lane tile for the one-hot gather matmul
B = 2            # batch
S = 8            # sequence length
BS = B * S
H = 32           # hidden size (bert.config.hidden_size, scaled down)
NH = 2           # attention heads
HD = H // NH     # head dim
I = 64           # FFN intermediate size
LAYERS = 2       # encoder layers
FC1 = 128        # fc1 out
FC2 = 64         # fc2 out
NUM_CLASSES = 2
OUT_PAD = 128    # lane-padded classifier output width
ROW_W = 128      # lane width of the packed bias/LN row slab
LN_EPS = 1e-12
NEG_BIG = -1e9   # additive attention mask value
SCALE = 1.0 / (HD ** 0.5)

# ------------------------- packed row-slab layout ----------------------------
ROW_EMB_LN_G = 0
ROW_EMB_LN_B = 1
ROW_LAYER0 = 2
ROWS_PER_LAYER = 8
R_BQKV, R_BO, R_LN1G, R_LN1B, R_B1, R_B2, R_LN2G, R_LN2B = range(ROWS_PER_LAYER)
ROW_BP = ROW_LAYER0 + ROWS_PER_LAYER * LAYERS
ROW_BF1 = ROW_BP + 1
ROW_BF2 = ROW_BP + 2
ROW_BF3 = ROW_BP + 3
N_ROWS = ROW_BF3 + 1


# ------------------------------- helpers -------------------------------------
def _fullspec(shape):
    # Full-array block (block_shape == array shape satisfies the (8,128) rule).
    ndim = len(shape)
    return pl.BlockSpec(shape, lambda *_, n=ndim: (0,) * n)


def _row(ref, r, w):
    # Static (1, w) slice out of the packed (N_ROWS, 128) row slab.
    return ref[r:r + 1, :w]


def _layernorm(x, gamma, beta):
    mean = jnp.mean(x, axis=-1, keepdims=True)
    var = jnp.mean((x - mean) ** 2, axis=-1, keepdims=True)
    inv = jax.lax.rsqrt(var + LN_EPS)
    return (x - mean) * inv * gamma + beta


def _gelu(x):
    # TODO(synk): tanh-approximation GELU (HF BERT default is exact erf GELU).
    c = 0.7978845608028654  # sqrt(2/pi)
    return 0.5 * x * (1.0 + jnp.tanh(c * (x + 0.044715 * x * x * x)))


def _softmax_attn(x):
    # Internal attention softmax: approximate reciprocal rides the EUP slot.
    m = jnp.max(x, axis=-1, keepdims=True)
    e = jnp.exp(x - m)
    return e * pl.reciprocal(jnp.sum(e, axis=-1, keepdims=True), approx=True)


def _softmax_exact(x):
    # Final output softmax: exact f32 divide so probabilities sum to 1.
    m = jnp.max(x, axis=-1, keepdims=True)
    e = jnp.exp(x - m)
    return e / jnp.sum(e, axis=-1, keepdims=True)


# ------------------------------ fused kernel ---------------------------------
def fused_kernel(ids_ref,       # (BS, 1)  int32
                 mask_ref,      # (BS, BS) f32 additive attention mask
                 wemb_ref,      # (VOCAB_PAD, H)
                 pos_ref,       # (BS, H)  positional + token-type embeddings
                 rows_ref,      # (N_ROWS, 128) packed biases / LN params
                 encw_ref,      # (LAYERS, H, 3H + H + I)  [Wqkv | Wo | W1]
                 encw2_ref,     # (LAYERS, I, H)           W2
                 headwa_ref,    # (H, H + FC1)             [Wpool | Wfc1]
                 wf2_ref,       # (FC1, FC2)
                 wf3_ref,       # (FC2, OUT_PAD)
                 o_ref):        # (BS, OUT_PAD)
    f32 = jnp.float32

    # ---- embedding gather as one one-hot MXU matmul --------------------------
    ids = ids_ref[...]                                             # (BS, 1)
    vocab_iota = jax.lax.broadcasted_iota(jnp.int32, (BS, VOCAB_PAD), 1)
    one_hot = (vocab_iota == ids).astype(f32)                      # (BS, 128)
    x = jnp.dot(one_hot, wemb_ref[...], preferred_element_type=f32)  # (BS, H)
    x = x + pos_ref[...]
    x = _layernorm(x, _row(rows_ref, ROW_EMB_LN_G, H),
                   _row(rows_ref, ROW_EMB_LN_B, H))

    add_mask = mask_ref[...]                                       # (BS, BS)

    # ---- encoder layers (statically unrolled), activations stay resident ----
    for l in range(LAYERS):
        base = ROW_LAYER0 + ROWS_PER_LAYER * l
        w_all = encw_ref[l]                                        # (H, 192)
        wqkv = w_all[:, :3 * H]                                    # (H, 96)
        wo = w_all[:, 3 * H:4 * H]                                 # (H, H)
        w1 = w_all[:, 4 * H:4 * H + I]                             # (H, I)

        qkv = (jnp.dot(x, wqkv, preferred_element_type=f32)
               + _row(rows_ref, base + R_BQKV, 3 * H))             # (BS, 96)

        ctx_parts = []
        for h in range(NH):
            qh = qkv[:, h * HD:(h + 1) * HD]
            kh = qkv[:, H + h * HD:H + (h + 1) * HD]
            vh = qkv[:, 2 * H + h * HD:2 * H + (h + 1) * HD]
            s = jnp.einsum('qd,kd->qk', qh, kh,
                           preferred_element_type=f32) * SCALE + add_mask
            p = _softmax_attn(s)                                   # (BS, BS)
            ctx_parts.append(jnp.dot(p, vh, preferred_element_type=f32))
        ctx = jnp.concatenate(ctx_parts, axis=-1)                  # (BS, H)

        attn = (jnp.dot(ctx, wo, preferred_element_type=f32)
                + _row(rows_ref, base + R_BO, H))
        # TODO(synk): attention/hidden dropout omitted (eval semantics).
        h1 = _layernorm(x + attn, _row(rows_ref, base + R_LN1G, H),
                        _row(rows_ref, base + R_LN1B, H))

        ff = _gelu(jnp.dot(h1, w1, preferred_element_type=f32)
                   + _row(rows_ref, base + R_B1, I))
        ff = (jnp.dot(ff, encw2_ref[l], preferred_element_type=f32)
              + _row(rows_ref, base + R_B2, H))
        x = _layernorm(h1 + ff, _row(rows_ref, base + R_LN2G, H),
                       _row(rows_ref, base + R_LN2B, H))

    # ---- pooler + MLP head + softmax, computed for ALL rows so the output ---
    # ---- store is a dense (BS, 128) slab; wrapper keeps only [CLS] rows. ----
    wa = headwa_ref[...]
    wp = wa[:, :H]
    wf1 = wa[:, H:H + FC1]
    pooled = jnp.tanh(jnp.dot(x, wp, preferred_element_type=f32)
                      + _row(rows_ref, ROW_BP, H))
    # TODO(synk): nn.Dropout(0.3) is identity here (eval/inference semantics).
    y = jnp.maximum(jnp.dot(pooled, wf1, preferred_element_type=f32)
                    + _row(rows_ref, ROW_BF1, FC1), 0.0)
    y = jnp.maximum(jnp.dot(y, wf2_ref[...], preferred_element_type=f32)
                    + _row(rows_ref, ROW_BF2, FC2), 0.0)
    logits = (jnp.dot(y, wf3_ref[...], preferred_element_type=f32)
              + _row(rows_ref, ROW_BF3, OUT_PAD))
    # padded columns carry bias -1e30 -> ~0 probability after softmax (f32 safe)
    o_ref[...] = _softmax_exact(logits).astype(o_ref.dtype)


# --------------------------- parameter construction --------------------------
def make_params(key):
    def nrm(k, shape):
        return jax.random.normal(k, shape, jnp.float32) * 0.02

    keys = iter(jax.random.split(key, 64))
    p = {}

    # word embedding, vocab padded to one lane tile (extra rows never selected)
    wemb = nrm(next(keys), (VOCAB, H))
    p['wemb_pad'] = jnp.concatenate(
        [wemb, jnp.zeros((VOCAB_PAD - VOCAB, H), jnp.float32)], axis=0)

    # positional + token-type embeddings folded into one pre-tiled table
    pos_emb = nrm(next(keys), (S, H))
    type_emb = nrm(next(keys), (2, H))
    # TODO(synk): token_type_ids assumed all-zero (HF default when not provided).
    p['pos_type'] = jnp.tile(pos_emb, (B, 1)) + type_emb[0][None, :]   # (BS, H)

    rows = []

    def pad_row(v, fill=0.0):
        v = jnp.asarray(v, jnp.float32).reshape(1, -1)
        pad = ROW_W - v.shape[1]
        if pad:
            v = jnp.concatenate([v, jnp.full((1, pad), fill, jnp.float32)], 1)
        return v

    rows.append(pad_row(jnp.ones((H,))))        # emb LN gamma
    rows.append(pad_row(jnp.zeros((H,))))       # emb LN beta

    enc_w1_list, enc_w2_list = [], []
    for _ in range(LAYERS):
        wq = nrm(next(keys), (H, H))
        wk = nrm(next(keys), (H, H))
        wv = nrm(next(keys), (H, H))
        wo = nrm(next(keys), (H, H))
        w1 = nrm(next(keys), (H, I))
        w2 = nrm(next(keys), (I, H))
        wqkv = jnp.concatenate([wq, wk, wv], axis=1)                 # (H, 3H)
        enc_w1_list.append(jnp.concatenate([wqkv, wo, w1], axis=1))  # (H, 192)
        enc_w2_list.append(w2)                                       # (I, H)
        rows.append(pad_row(jnp.zeros((3 * H,))))   # bqkv
        rows.append(pad_row(jnp.zeros((H,))))       # bo
        rows.append(pad_row(jnp.ones((H,))))        # ln1 gamma
        rows.append(pad_row(jnp.zeros((H,))))       # ln1 beta
        rows.append(pad_row(jnp.zeros((I,))))       # b1
        rows.append(pad_row(jnp.zeros((H,))))       # b2
        rows.append(pad_row(jnp.ones((H,))))        # ln2 gamma
        rows.append(pad_row(jnp.zeros((H,))))       # ln2 beta
    p['enc_w1'] = jnp.stack(enc_w1_list)            # (L, H, 192)
    p['enc_w2'] = jnp.stack(enc_w2_list)            # (L, I, H)

    # pooler + classifier head (fc_out lane-padded to OUT_PAD)
    wp = nrm(next(keys), (H, H))
    wf1 = nrm(next(keys), (H, FC1))
    p['head_wa'] = jnp.concatenate([wp, wf1], axis=1)   # (H, H+FC1)
    p['wf2'] = nrm(next(keys), (FC1, FC2))
    wf3 = nrm(next(keys), (FC2, NUM_CLASSES))
    p['wf3'] = jnp.concatenate(
        [wf3, jnp.zeros((FC2, OUT_PAD - NUM_CLASSES), jnp.float32)], axis=1)
    rows.append(pad_row(jnp.zeros((H,))))       # bp
    rows.append(pad_row(jnp.zeros((FC1,))))     # bf1
    rows.append(pad_row(jnp.zeros((FC2,))))     # bf2
    rows.append(pad_row(jnp.zeros((NUM_CLASSES,)), fill=-1e30))   # bf3 + pad
    p['rows'] = jnp.concatenate(rows, axis=0)   # (N_ROWS, 128)
    assert p['rows'].shape == (N_ROWS, ROW_W)

    # TODO(synk): pretrained 'bert-base-uncased' weights replaced by synthetic
    # deterministic init (no file / network access allowed).
    return p


# ------------------------------ full forward ---------------------------------
def text_classifier_forward(params, input_ids, attention_mask):
    p = params
    ids2d = input_ids.reshape(BS, 1).astype(jnp.int32)              # (BS, 1)

    # additive attention mask precomputed once in the wrapper:
    # block-diagonal per example + key-padding, 0.0 where allowed else -1e9.
    keep = attention_mask.reshape(BS).astype(jnp.float32)           # (BS,)
    ex = jnp.arange(BS, dtype=jnp.int32) // S
    same_batch = ex[:, None] == ex[None, :]
    add_mask = jnp.where(jnp.logical_and(same_batch, keep[None, :] > 0.5),
                         0.0, NEG_BIG).astype(jnp.float32)          # (BS, BS)

    tensor_args = (ids2d, add_mask, p['wemb_pad'], p['pos_type'], p['rows'],
                   p['enc_w1'], p['enc_w2'], p['head_wa'], p['wf2'], p['wf3'])

    # advisory cost estimate so XLA schedules neighbors around this tiny call
    flops = 2 * BS * (
        VOCAB_PAD * H
        + LAYERS * (H * 3 * H + NH * (BS * HD + BS * HD) + H * H + H * I + I * H)
        + H * H + H * FC1 + FC1 * FC2 + FC2 * OUT_PAD)
    transcendentals = (LAYERS * NH * BS * BS + BS * OUT_PAD
                       + LAYERS * BS * I + BS * H)
    bytes_accessed = (sum(int(a.size) * a.dtype.itemsize for a in tensor_args)
                      + BS * OUT_PAD * 4)

    padded = pl.pallas_call(
        fused_kernel,
        out_shape=jax.ShapeDtypeStruct((BS, OUT_PAD), jnp.float32),
        grid=(1,),
        in_specs=[_fullspec(a.shape) for a in tensor_args],
        out_specs=_fullspec((BS, OUT_PAD)),
        cost_estimate=pl.CostEstimate(flops=flops,
                                      transcendentals=transcendentals,
                                      bytes_accessed=bytes_accessed),
    )(*tensor_args)

    # keep only the [CLS] rows (positions 0, S, 2S, ...) and real class columns
    return padded[0::S, :NUM_CLASSES]


# ---------------------------------- main --------------------------------------
if __name__ == "__main__":
    key = jax.random.PRNGKey(0)
    k_param, k_ids = jax.random.split(key)

    params = make_params(k_param)
    input_ids = jax.random.randint(k_ids, (B, S), 0, VOCAB, dtype=jnp.int32)
    attention_mask = jnp.ones((B, S), jnp.int32)
    attention_mask = attention_mask.at[1, -2:].set(0)   # exercise padding mask

    forward = jax.jit(text_classifier_forward)
    probs = forward(params, input_ids, attention_mask)
    probs = jax.block_until_ready(probs)

    assert probs.shape == (B, NUM_CLASSES)
    assert bool(jnp.all(jnp.isfinite(probs)))
    assert bool(jnp.all(jnp.abs(jnp.sum(probs, axis=-1) - 1.0) < 1e-5))
    print("KERNEL_OK")
</pallas_src>

<mosaic_0001>
module attributes {stable_mosaic.version = 11 : i64} {
  func.func @fused_kernel(%arg0: i32, %arg1: memref<16x1xi32, #tpu.memory_space<vmem>>, %arg2: memref<16x16xf32, #tpu.memory_space<vmem>>, %arg3: memref<128x32xf32, #tpu.memory_space<vmem>>, %arg4: memref<16x32xf32, #tpu.memory_space<vmem>>, %arg5: memref<22x128xf32, #tpu.memory_space<vmem>>, %arg6: memref<2x32x192xf32, #tpu.memory_space<vmem>>, %arg7: memref<2x64x32xf32, #tpu.memory_space<vmem>>, %arg8: memref<32x160xf32, #tpu.memory_space<vmem>>, %arg9: memref<128x64xf32, #tpu.memory_space<vmem>>, %arg10: memref<64x128xf32, #tpu.memory_space<vmem>>, %arg11: memref<16x128xf32, #tpu.memory_space<vmem>>) attributes {dimension_semantics = [#tpu.dimension_semantics<arbitrary>], iteration_bounds = array<i64: 1>, scalar_prefetch = 0 : i64, scratch_operands = 0 : i64, tpu.core_type = #tpu.core_type<tc>, window_params = [{pipeline_mode = #tpu.pipeline_mode<synchronous>, transform_indices = @transform_0, window_bounds = array<i64: 16, 1>}, {pipeline_mode = #tpu.pipeline_mode<synchronous>, transform_indices = @transform_1, window_bounds = array<i64: 16, 16>}, {pipeline_mode = #tpu.pipeline_mode<synchronous>, transform_indices = @transform_2, window_bounds = array<i64: 128, 32>}, {pipeline_mode = #tpu.pipeline_mode<synchronous>, transform_indices = @transform_3, window_bounds = array<i64: 16, 32>}, {pipeline_mode = #tpu.pipeline_mode<synchronous>, transform_indices = @transform_4, window_bounds = array<i64: 22, 128>}, {pipeline_mode = #tpu.pipeline_mode<synchronous>, transform_indices = @transform_5, window_bounds = array<i64: 2, 32, 192>}, {pipeline_mode = #tpu.pipeline_mode<synchronous>, transform_indices = @transform_6, window_bounds = array<i64: 2, 64, 32>}, {pipeline_mode = #tpu.pipeline_mode<synchronous>, transform_indices = @transform_7, window_bounds = array<i64: 32, 160>}, {pipeline_mode = #tpu.pipeline_mode<synchronous>, transform_indices = @transform_8, window_bounds = array<i64: 128, 64>}, {pipeline_mode = #tpu.pipeline_mode<synchronous>, transform_indices = @transform_9, window_bounds = array<i64: 64, 128>}, {pipeline_mode = #tpu.pipeline_mode<synchronous>, transform_indices = @transform_10, window_bounds = array<i64: 16, 128>}]} {
    %c0 = arith.constant 0 : index
    %c0_0 = arith.constant 0 : index
    %0 = vector.load %arg1[%c0, %c0_0] : memref<16x1xi32, #tpu.memory_space<vmem>>, vector<16x1xi32>
    %1 = tpu.iota {dimensions = array<i32: 1>} : vector<16x128xi32>
    %2 = vector.broadcast %0 : vector<16x1xi32> to vector<16x128xi32>
    %3 = arith.cmpi eq, %1, %2 : vector<16x128xi32>
    %4 = arith.extui %3 : vector<16x128xi1> to vector<16x128xi32>
    %5 = arith.sitofp %4 : vector<16x128xi32> to vector<16x128xf32>
    %c0_1 = arith.constant 0 : index
    %c0_2 = arith.constant 0 : index
    %6 = vector.load %arg3[%c0_1, %c0_2] : memref<128x32xf32, #tpu.memory_space<vmem>>, vector<128x32xf32>
    %cst = arith.constant dense<0.000000e+00> : vector<16x32xf32>
    %7 = tpu.matmul %5, %6, %cst {dimension_numbers = #tpu.dot_dimension_numbers<[1], [0], [0], [1], [0, 0, 1, 1], [], []>} : vector<16x128xf32>, vector<128x32xf32>, vector<16x32xf32> -> vector<16x32xf32>
    %c0_3 = arith.constant 0 : index
    %c0_4 = arith.constant 0 : index
    %8 = vector.load %arg4[%c0_3, %c0_4] : memref<16x32xf32, #tpu.memory_space<vmem>>, vector<16x32xf32>
    %9 = arith.addf %7, %8 : vector<16x32xf32>
    %c0_5 = arith.constant 0 : index
    %c0_6 = arith.constant 0 : index
    %10 = vector.load %arg5[%c0_5, %c0_6] : memref<22x128xf32, #tpu.memory_space<vmem>>, vector<1x32xf32>
    %c1 = arith.constant 1 : index
    %c0_7 = arith.constant 0 : index
    %11 = vector.load %arg5[%c1, %c0_7] : memref<22x128xf32, #tpu.memory_space<vmem>>, vector<1x32xf32>
    %cst_8 = arith.constant dense<0.000000e+00> : vector<16xf32>
    %12 = vector.multi_reduction <add>, %9, %cst_8 [1] : vector<16x32xf32> to vector<16xf32>
    %13 = vector.shape_cast %12 : vector<16xf32> to vector<16x1xf32>
    %cst_9 = arith.constant 3.200000e+01 : f32
    %14 = vector.broadcast %cst_9 : f32 to vector<16x1xf32>
    %15 = arith.divf %13, %14 : vector<16x1xf32>
    %16 = vector.broadcast %15 : vector<16x1xf32> to vector<16x32xf32>
    %17 = arith.subf %9, %16 : vector<16x32xf32>
    %18 = arith.mulf %17, %17 : vector<16x32xf32>
    %cst_10 = arith.constant dense<0.000000e+00> : vector<16xf32>
    %19 = vector.multi_reduction <add>, %18, %cst_10 [1] : vector<16x32xf32> to vector<16xf32>
    %20 = vector.shape_cast %19 : vector<16xf32> to vector<16x1xf32>
    %cst_11 = arith.constant 3.200000e+01 : f32
    %21 = vector.broadcast %cst_11 : f32 to vector<16x1xf32>
    %22 = arith.divf %20, %21 : vector<16x1xf32>
    %cst_12 = arith.constant 9.99999996E-13 : f32
    %23 = vector.broadcast %cst_12 : f32 to vector<16x1xf32>
    %24 = arith.addf %22, %23 : vector<16x1xf32>
    %25 = math.rsqrt %24 : vector<16x1xf32>
    %26 = vector.broadcast %15 : vector<16x1xf32> to vector<16x32xf32>
    %27 = arith.subf %9, %26 : vector<16x32xf32>
    %28 = vector.broadcast %25 : vector<16x1xf32> to vector<16x32xf32>
    %29 = arith.mulf %27, %28 : vector<16x32xf32>
    %30 = vector.broadcast %10 : vector<1x32xf32> to vector<16x32xf32>
    %31 = arith.mulf %29, %30 : vector<16x32xf32>
    %32 = vector.broadcast %11 : vector<1x32xf32> to vector<16x32xf32>
    %33 = arith.addf %31, %32 : vector<16x32xf32>
    %c0_13 = arith.constant 0 : index
    %c0_14 = arith.constant 0 : index
    %34 = vector.load %arg2[%c0_13, %c0_14] : memref<16x16xf32, #tpu.memory_space<vmem>>, vector<16x16xf32>
    %c0_15 = arith.constant 0 : index
    %c0_16 = arith.constant 0 : index
    %c0_17 = arith.constant 0 : index
    %35 = vector.load %arg6[%c0_15, %c0_16, %c0_17] : memref<2x32x192xf32, #tpu.memory_space<vmem>>, vector<1x32x192xf32>
    %36 = vector.shape_cast %35 : vector<1x32x192xf32> to vector<32x192xf32>
    %37 = vector.extract_strided_slice %36 {offsets = [0, 0], sizes = [32, 96], strides = [1, 1]} : vector<32x192xf32> to vector<32x96xf32>
    %38 = vector.extract_strided_slice %36 {offsets = [0, 96], sizes = [32, 32], strides = [1, 1]} : vector<32x192xf32> to vector<32x32xf32>
    %39 = vector.extract_strided_slice %36 {offsets = [0, 128], sizes = [32, 64], strides = [1, 1]} : vector<32x192xf32> to vector<32x64xf32>
    %cst_18 = arith.constant dense<0.000000e+00> : vector<16x96xf32>
    %40 = tpu.matmul %33, %37, %cst_18 {dimension_numbers = #tpu.dot_dimension_numbers<[1], [0], [0], [1], [0, 0, 1, 1], [], []>} : vector<16x32xf32>, vector<32x96xf32>, vector<16x96xf32> -> vector<16x96xf32>
    %c2 = arith.constant 2 : index
    %c0_19 = arith.constant 0 : index
    %41 = vector.load %arg5[%c2, %c0_19] : memref<22x128xf32, #tpu.memory_space<vmem>>, vector<1x96xf32>
    %42 = vector.broadcast %41 : vector<1x96xf32> to vector<16x96xf32>
    %43 = arith.addf %40, %42 : vector<16x96xf32>
    %44 = vector.extract_strided_slice %43 {offsets = [0, 0], sizes = [16, 16], strides = [1, 1]} : vector<16x96xf32> to vector<16x16xf32>
    %45 = vector.extract_strided_slice %43 {offsets = [0, 32], sizes = [16, 16], strides = [1, 1]} : vector<16x96xf32> to vector<16x16xf32>
    %46 = vector.extract_strided_slice %43 {offsets = [0, 64], sizes = [16, 16], strides = [1, 1]} : vector<16x96xf32> to vector<16x16xf32>
    "tpu.trace_start"() <{level = 10 : i32, message = "qd,kd->qk"}> : () -> ()
    %cst_20 = arith.constant dense<0.000000e+00> : vector<16x16xf32>
    %47 = tpu.matmul %44, %45, %cst_20 {dimension_numbers = #tpu.dot_dimension_numbers<[1], [1], [0], [0], [0, 0, 1, 0], [], []>} : vector<16x16xf32>, vector<16x16xf32>, vector<16x16xf32> -> vector<16x16xf32>
    "tpu.trace_stop"() : () -> ()
    %cst_21 = arith.constant 2.500000e-01 : f32
    %48 = vector.broadcast %cst_21 : f32 to vector<16x16xf32>
    %49 = arith.mulf %47, %48 : vector<16x16xf32>
    %50 = arith.addf %49, %34 : vector<16x16xf32>
    %cst_22 = arith.constant dense<0xFF800000> : vector<16xf32>
    %51 = vector.multi_reduction <maximumf>, %50, %cst_22 [1] : vector<16x16xf32> to vector<16xf32>
    %52 = vector.shape_cast %51 : vector<16xf32> to vector<16x1xf32>
    %53 = vector.broadcast %52 : vector<16x1xf32> to vector<16x16xf32>
    %54 = arith.subf %50, %53 : vector<16x16xf32>
    %55 = math.exp %54 : vector<16x16xf32>
    %cst_23 = arith.constant dense<0.000000e+00> : vector<16xf32>
    %56 = vector.multi_reduction <add>, %55, %cst_23 [1] : vector<16x16xf32> to vector<16xf32>
    %57 = vector.shape_cast %56 : vector<16xf32> to vector<16x1xf32>
    %58 = tpu.reciprocal %57 {approx = true} : vector<16x1xf32> -> vector<16x1xf32>
    %59 = vector.broadcast %58 : vector<16x1xf32> to vector<16x16xf32>
    %60 = arith.mulf %55, %59 : vector<16x16xf32>
    %cst_24 = arith.constant dense<0.000000e+00> : vector<16x16xf32>
    %61 = tpu.matmul %60, %46, %cst_24 {dimension_numbers = #tpu.dot_dimension_numbers<[1], [0], [0], [1], [0, 0, 1, 1], [], []>} : vector<16x16xf32>, vector<16x16xf32>, vector<16x16xf32> -> vector<16x16xf32>
    %62 = vector.extract_strided_slice %43 {offsets = [0, 16], sizes = [16, 16], strides = [1, 1]} : vector<16x96xf32> to vector<16x16xf32>
    %63 = vector.extract_strided_slice %43 {offsets = [0, 48], sizes = [16, 16], strides = [1, 1]} : vector<16x96xf32> to vector<16x16xf32>
    %64 = vector.extract_strided_slice %43 {offsets = [0, 80], sizes = [16, 16], strides = [1, 1]} : vector<16x96xf32> to vector<16x16xf32>
    "tpu.trace_start"() <{level = 10 : i32, message = "qd,kd->qk"}> : () -> ()
    %cst_25 = arith.constant dense<0.000000e+00> : vector<16x16xf32>
    %65 = tpu.matmul %62, %63, %cst_25 {dimension_numbers = #tpu.dot_dimension_numbers<[1], [1], [0], [0], [0, 0, 1, 0], [], []>} : vector<16x16xf32>, vector<16x16xf32>, vector<16x16xf32> -> vector<16x16xf32>
    "tpu.trace_stop"() : () -> ()
    %cst_26 = arith.constant 2.500000e-01 : f32
    %66 = vector.broadcast %cst_26 : f32 to vector<16x16xf32>
    %67 = arith.mulf %65, %66 : vector<16x16xf32>
    %68 = arith.addf %67, %34 : vector<16x16xf32>
    %cst_27 = arith.constant dense<0xFF800000> : vector<16xf32>
    %69 = vector.multi_reduction <maximumf>, %68, %cst_27 [1] : vector<16x16xf32> to vector<16xf32>
    %70 = vector.shape_cast %69 : vector<16xf32> to vector<16x1xf32>
    %71 = vector.broadcast %70 : vector<16x1xf32> to vector<16x16xf32>
    %72 = arith.subf %68, %71 : vector<16x16xf32>
    %73 = math.exp %72 : vector<16x16xf32>
    %cst_28 = arith.constant dense<0.000000e+00> : vector<16xf32>
    %74 = vector.multi_reduction <add>, %73, %cst_28 [1] : vector<16x16xf32> to vector<16xf32>
    %75 = vector.shape_cast %74 : vector<16xf32> to vector<16x1xf32>
    %76 = tpu.reciprocal %75 {approx = true} : vector<16x1xf32> -> vector<16x1xf32>
    %77 = vector.broadcast %76 : vector<16x1xf32> to vector<16x16xf32>
    %78 = arith.mulf %73, %77 : vector<16x16xf32>
    %cst_29 = arith.constant dense<0.000000e+00> : vector<16x16xf32>
    %79 = tpu.matmul %78, %64, %cst_29 {dimension_numbers = #tpu.dot_dimension_numbers<[1], [0], [0], [1], [0, 0, 1, 1], [], []>} : vector<16x16xf32>, vector<16x16xf32>, vector<16x16xf32> -> vector<16x16xf32>
    %80 = tpu.concatenate %61, %79 in 1 : vector<16x16xf32>, vector<16x16xf32> -> vector<16x32xf32>
    %cst_30 = arith.constant dense<0.000000e+00> : vector<16x32xf32>
    %81 = tpu.matmul %80, %38, %cst_30 {dimension_numbers = #tpu.dot_dimension_numbers<[1], [0], [0], [1], [0, 0, 1, 1], [], []>} : vector<16x32xf32>, vector<32x32xf32>, vector<16x32xf32> -> vector<16x32xf32>
    %c3 = arith.constant 3 : index
    %c0_31 = arith.constant 0 : index
    %82 = vector.load %arg5[%c3, %c0_31] : memref<22x128xf32, #tpu.memory_space<vmem>>, vector<1x32xf32>
    %83 = vector.broadcast %82 : vector<1x32xf32> to vector<16x32xf32>
    %84 = arith.addf %81, %83 : vector<16x32xf32>
    %85 = arith.addf %33, %84 : vector<16x32xf32>
    %c4 = arith.constant 4 : index
    %c0_32 = arith.constant 0 : index
    %86 = vector.load %arg5[%c4, %c0_32] : memref<22x128xf32, #tpu.memory_space<vmem>>, vector<1x32xf32>
    %c5 = arith.constant 5 : index
    %c0_33 = arith.constant 0 : index
    %87 = vector.load %arg5[%c5, %c0_33] : memref<22x128xf32, #tpu.memory_space<vmem>>, vector<1x32xf32>
    %cst_34 = arith.constant dense<0.000000e+00> : vector<16xf32>
    %88 = vector.multi_reduction <add>, %85, %cst_34 [1] : vector<16x32xf32> to vector<16xf32>
    %89 = vector.shape_cast %88 : vector<16xf32> to vector<16x1xf32>
    %cst_35 = arith.constant 3.200000e+01 : f32
    %90 = vector.broadcast %cst_35 : f32 to vector<16x1xf32>
    %91 = arith.divf %89, %90 : vector<16x1xf32>
    %92 = vector.broadcast %91 : vector<16x1xf32> to vector<16x32xf32>
    %93 = arith.subf %85, %92 : vector<16x32xf32>
    %94 = arith.mulf %93, %93 : vector<16x32xf32>
    %cst_36 = arith.constant dense<0.000000e+00> : vector<16xf32>
    %95 = vector.multi_reduction <add>, %94, %cst_36 [1] : vector<16x32xf32> to vector<16xf32>
    %96 = vector.shape_cast %95 : vector<16xf32> to vector<16x1xf32>
    %cst_37 = arith.constant 3.200000e+01 : f32
    %97 = vector.broadcast %cst_37 : f32 to vector<16x1xf32>
    %98 = arith.divf %96, %97 : vector<16x1xf32>
    %cst_38 = arith.constant 9.99999996E-13 : f32
    %99 = vector.broadcast %cst_38 : f32 to vector<16x1xf32>
    %100 = arith.addf %98, %99 : vector<16x1xf32>
    %101 = math.rsqrt %100 : vector<16x1xf32>
    %102 = vector.broadcast %91 : vector<16x1xf32> to vector<16x32xf32>
    %103 = arith.subf %85, %102 : vector<16x32xf32>
    %104 = vector.broadcast %101 : vector<16x1xf32> to vector<16x32xf32>
    %105 = arith.mulf %103, %104 : vector<16x32xf32>
    %106 = vector.broadcast %86 : vector<1x32xf32> to vector<16x32xf32>
    %107 = arith.mulf %105, %106 : vector<16x32xf32>
    %108 = vector.broadcast %87 : vector<1x32xf32> to vector<16x32xf32>
    %109 = arith.addf %107, %108 : vector<16x32xf32>
    %cst_39 = arith.constant dense<0.000000e+00> : vector<16x64xf32>
    %110 = tpu.matmul %109, %39, %cst_39 {dimension_numbers = #tpu.dot_dimension_numbers<[1], [0], [0], [1], [0, 0, 1, 1], [], []>} : vector<16x32xf32>, vector<32x64xf32>, vector<16x64xf32> -> vector<16x64xf32>
    %c6 = arith.constant 6 : index
    %c0_40 = arith.constant 0 : index
    %111 = vector.load %arg5[%c6, %c0_40] : memref<22x128xf32, #tpu.memory_space<vmem>>, vector<1x64xf32>
    %112 = vector.broadcast %111 : vector<1x64xf32> to vector<16x64xf32>
    %113 = arith.addf %110, %112 : vector<16x64xf32>
    %cst_41 = arith.constant 5.000000e-01 : f32
    %114 = vector.broadcast %cst_41 : f32 to vector<16x64xf32>
    %115 = arith.mulf %114, %113 : vector<16x64xf32>
    %cst_42 = arith.constant 4.471500e-02 : f32
    %116 = vector.broadcast %cst_42 : f32 to vector<16x64xf32>
    %117 = arith.mulf %116, %113 : vector<16x64xf32>
    %118 = arith.mulf %117, %113 : vector<16x64xf32>
    %119 = arith.mulf %118, %113 : vector<16x64xf32>
    %120 = arith.addf %113, %119 : vector<16x64xf32>
    %cst_43 = arith.constant 0.797884583 : f32
    %121 = vector.broadcast %cst_43 : f32 to vector<16x64xf32>
    %122 = arith.mulf %121, %120 : vector<16x64xf32>
    %123 = math.tanh %122 : vector<16x64xf32>
    %cst_44 = arith.constant 1.000000e+00 : f32
    %124 = vector.broadcast %cst_44 : f32 to vector<16x64xf32>
    %125 = arith.addf %124, %123 : vector<16x64xf32>
    %126 = arith.mulf %115, %125 : vector<16x64xf32>
    %c0_45 = arith.constant 0 : index
    %c0_46 = arith.constant 0 : index
    %c0_47 = arith.constant 0 : index
    %127 = vector.load %arg7[%c0_45, %c0_46, %c0_47] : memref<2x64x32xf32, #tpu.memory_space<vmem>>, vector<1x64x32xf32>
    %128 = vector.shape_cast %127 : vector<1x64x32xf32> to vector<64x32xf32>
    %cst_48 = arith.constant dense<0.000000e+00> : vector<16x32xf32>
    %129 = tpu.matmul %126, %128, %cst_48 {dimension_numbers = #tpu.dot_dimension_numbers<[1], [0], [0], [1], [0, 0, 1, 1], [], []>} : vector<16x64xf32>, vector<64x32xf32>, vector<16x32xf32> -> vector<16x32xf32>
    %c7 = arith.constant 7 : index
    %c0_49 = arith.constant 0 : index
    %130 = vector.load %arg5[%c7, %c0_49] : memref<22x128xf32, #tpu.memory_space<vmem>>, vector<1x32xf32>
    %131 = vector.broadcast %130 : vector<1x32xf32> to vector<16x32xf32>
    %132 = arith.addf %129, %131 : vector<16x32xf32>
    %133 = arith.addf %109, %132 : vector<16x32xf32>
    %c8 = arith.constant 8 : index
    %c0_50 = arith.constant 0 : index
    %134 = vector.load %arg5[%c8, %c0_50] : memref<22x128xf32, #tpu.memory_space<vmem>>, vector<1x32xf32>
    %c9 = arith.constant 9 : index
    %c0_51 = arith.constant 0 : index
    %135 = vector.load %arg5[%c9, %c0_51] : memref<22x128xf32, #tpu.memory_space<vmem>>, vector<1x32xf32>
    %cst_52 = arith.constant dense<0.000000e+00> : vector<16xf32>
    %136 = vector.multi_reduction <add>, %133, %cst_52 [1] : vector<16x32xf32> to vector<16xf32>
    %137 = vector.shape_cast %136 : vector<16xf32> to vector<16x1xf32>
    %cst_53 = arith.constant 3.200000e+01 : f32
    %138 = vector.broadcast %cst_53 : f32 to vector<16x1xf32>
    %139 = arith.divf %137, %138 : vector<16x1xf32>
    %140 = vector.broadcast %139 : vector<16x1xf32> to vector<16x32xf32>
    %141 = arith.subf %133, %140 : vector<16x32xf32>
    %142 = arith.mulf %141, %141 : vector<16x32xf32>
    %cst_54 = arith.constant dense<0.000000e+00> : vector<16xf32>
    %143 = vector.multi_reduction <add>, %142, %cst_54 [1] : vector<16x32xf32> to vector<16xf32>
    %144 = vector.shape_cast %143 : vector<16xf32> to vector<16x1xf32>
    %cst_55 = arith.constant 3.200000e+01 : f32
    %145 = vector.broadcast %cst_55 : f32 to vector<16x1xf32>
    %146 = arith.divf %144, %145 : vector<16x1xf32>
    %cst_56 = arith.constant 9.99999996E-13 : f32
    %147 = vector.broadcast %cst_56 : f32 to vector<16x1xf32>
    %148 = arith.addf %146, %147 : vector<16x1xf32>
    %149 = math.rsqrt %148 : vector<16x1xf32>
    %150 = vector.broadcast %139 : vector<16x1xf32> to vector<16x32xf32>
    %151 = arith.subf %133, %150 : vector<16x32xf32>
    %152 = vector.broadcast %149 : vector<16x1xf32> to vector<16x32xf32>
    %153 = arith.mulf %151, %152 : vector<16x32xf32>
    %154 = vector.broadcast %134 : vector<1x32xf32> to vector<16x32xf32>
    %155 = arith.mulf %153, %154 : vector<16x32xf32>
    %156 = vector.broadcast %135 : vector<1x32xf32> to vector<16x32xf32>
    %157 = arith.addf %155, %156 : vector<16x32xf32>
    %c1_57 = arith.constant 1 : index
    %c0_58 = arith.constant 0 : index
    %c0_59 = arith.constant 0 : index
    %158 = vector.load %arg6[%c1_57, %c0_58, %c0_59] : memref<2x32x192xf32, #tpu.memory_space<vmem>>, vector<1x32x192xf32>
    %159 = vector.shape_cast %158 : vector<1x32x192xf32> to vector<32x192xf32>
    %160 = vector.extract_strided_slice %159 {offsets = [0, 0], sizes = [32, 96], strides = [1, 1]} : vector<32x192xf32> to vector<32x96xf32>
    %161 = vector.extract_strided_slice %159 {offsets = [0, 96], sizes = [32, 32], strides = [1, 1]} : vector<32x192xf32> to vector<32x32xf32>
    %162 = vector.extract_strided_slice %159 {offsets = [0, 128], sizes = [32, 64], strides = [1, 1]} : vector<32x192xf32> to vector<32x64xf32>
    %cst_60 = arith.constant dense<0.000000e+00> : vector<16x96xf32>
    %163 = tpu.matmul %157, %160, %cst_60 {dimension_numbers = #tpu.dot_dimension_numbers<[1], [0], [0], [1], [0, 0, 1, 1], [], []>} : vector<16x32xf32>, vector<32x96xf32>, vector<16x96xf32> -> vector<16x96xf32>
    %c10 = arith.constant 10 : index
    %c0_61 = arith.constant 0 : index
    %164 = vector.load %arg5[%c10, %c0_61] : memref<22x128xf32, #tpu.memory_space<vmem>>, vector<1x96xf32>
    %165 = vector.broadcast %164 : vector<1x96xf32> to vector<16x96xf32>
    %166 = arith.addf %163, %165 : vector<16x96xf32>
    %167 = vector.extract_strided_slice %166 {offsets = [0, 0], sizes = [16, 16], strides = [1, 1]} : vector<16x96xf32> to vector<16x16xf32>
    %168 = vector.extract_strided_slice %166 {offsets = [0, 32], sizes = [16, 16], strides = [1, 1]} : vector<16x96xf32> to vector<16x16xf32>
    %169 = vector.extract_strided_slice %166 {offsets = [0, 64], sizes = [16, 16], strides = [1, 1]} : vector<16x96xf32> to vector<16x16xf32>
    "tpu.trace_start"() <{level = 10 : i32, message = "qd,kd->qk"}> : () -> ()
    %cst_62 = arith.constant dense<0.000000e+00> : vector<16x16xf32>
    %170 = tpu.matmul %167, %168, %cst_62 {dimension_numbers = #tpu.dot_dimension_numbers<[1], [1], [0], [0], [0, 0, 1, 0], [], []>} : vector<16x16xf32>, vector<16x16xf32>, vector<16x16xf32> -> vector<16x16xf32>
    "tpu.trace_stop"() : () -> ()
    %cst_63 = arith.constant 2.500000e-01 : f32
    %171 = vector.broadcast %cst_63 : f32 to vector<16x16xf32>
    %172 = arith.mulf %170, %171 : vector<16x16xf32>
    %173 = arith.addf %172, %34 : vector<16x16xf32>
    %cst_64 = arith.constant dense<0xFF800000> : vector<16xf32>
    %174 = vector.multi_reduction <maximumf>, %173, %cst_64 [1] : vector<16x16xf32> to vector<16xf32>
    %175 = vector.shape_cast %174 : vector<16xf32> to vector<16x1xf32>
    %176 = vector.broadcast %175 : vector<16x1xf32> to vector<16x16xf32>
    %177 = arith.subf %173, %176 : vector<16x16xf32>
    %178 = math.exp %177 : vector<16x16xf32>
    %cst_65 = arith.constant dense<0.000000e+00> : vector<16xf32>
    %179 = vector.multi_reduction <add>, %178, %cst_65 [1] : vector<16x16xf32> to vector<16xf32>
    %180 = vector.shape_cast %179 : vector<16xf32> to vector<16x1xf32>
    %181 = tpu.reciprocal %180 {approx = true} : vector<16x1xf32> -> vector<16x1xf32>
    %182 = vector.broadcast %181 : vector<16x1xf32> to vector<16x16xf32>
    %183 = arith.mulf %178, %182 : vector<16x16xf32>
    %cst_66 = arith.constant dense<0.000000e+00> : vector<16x16xf32>
    %184 = tpu.matmul %183, %169, %cst_66 {dimension_numbers = #tpu.dot_dimension_numbers<[1], [0], [0], [1], [0, 0, 1, 1], [], []>} : vector<16x16xf32>, vector<16x16xf32>, vector<16x16xf32> -> vector<16x16xf32>
    %185 = vector.extract_strided_slice %166 {offsets = [0, 16], sizes = [16, 16], strides = [1, 1]} : vector<16x96xf32> to vector<16x16xf32>
    %186 = vector.extract_strided_slice %166 {offsets = [0, 48], sizes = [16, 16], strides = [1, 1]} : vector<16x96xf32> to vector<16x16xf32>
    %187 = vector.extract_strided_slice %166 {offsets = [0, 80], sizes = [16, 16], strides = [1, 1]} : vector<16x96xf32> to vector<16x16xf32>
    "tpu.trace_start"() <{level = 10 : i32, message = "qd,kd->qk"}> : () -> ()
    %cst_67 = arith.constant dense<0.000000e+00> : vector<16x16xf32>
    %188 = tpu.matmul %185, %186, %cst_67 {dimension_numbers = #tpu.dot_dimension_numbers<[1], [1], [0], [0], [0, 0, 1, 0], [], []>} : vector<16x16xf32>, vector<16x16xf32>, vector<16x16xf32> -> vector<16x16xf32>
    "tpu.trace_stop"() : () -> ()
    %cst_68 = arith.constant 2.500000e-01 : f32
    %189 = vector.broadcast %cst_68 : f32 to vector<16x16xf32>
    %190 = arith.mulf %188, %189 : vector<16x16xf32>
    %191 = arith.addf %190, %34 : vector<16x16xf32>
    %cst_69 = arith.constant dense<0xFF800000> : vector<16xf32>
    %192 = vector.multi_reduction <maximumf>, %191, %cst_69 [1] : vector<16x16xf32> to vector<16xf32>
    %193 = vector.shape_cast %192 : vector<16xf32> to vector<16x1xf32>
    %194 = vector.broadcast %193 : vector<16x1xf32> to vector<16x16xf32>
    %195 = arith.subf %191, %194 : vector<16x16xf32>
    %196 = math.exp %195 : vector<16x16xf32>
    %cst_70 = arith.constant dense<0.000000e+00> : vector<16xf32>
    %197 = vector.multi_reduction <add>, %196, %cst_70 [1] : vector<16x16xf32> to vector<16xf32>
    %198 = vector.shape_cast %197 : vector<16xf32> to vector<16x1xf32>
    %199 = tpu.reciprocal %198 {approx = true} : vector<16x1xf32> -> vector<16x1xf32>
    %200 = vector.broadcast %199 : vector<16x1xf32> to vector<16x16xf32>
    %201 = arith.mulf %196, %200 : vector<16x16xf32>
    %cst_71 = arith.constant dense<0.000000e+00> : vector<16x16xf32>
    %202 = tpu.matmul %201, %187, %cst_71 {dimension_numbers = #tpu.dot_dimension_numbers<[1], [0], [0], [1], [0, 0, 1, 1], [], []>} : vector<16x16xf32>, vector<16x16xf32>, vector<16x16xf32> -> vector<16x16xf32>
    %203 = tpu.concatenate %184, %202 in 1 : vector<16x16xf32>, vector<16x16xf32> -> vector<16x32xf32>
    %cst_72 = arith.constant dense<0.000000e+00> : vector<16x32xf32>
    %204 = tpu.matmul %203, %161, %cst_72 {dimension_numbers = #tpu.dot_dimension_numbers<[1], [0], [0], [1], [0, 0, 1, 1], [], []>} : vector<16x32xf32>, vector<32x32xf32>, vector<16x32xf32> -> vector<16x32xf32>
    %c11 = arith.constant 11 : index
    %c0_73 = arith.constant 0 : index
    %205 = vector.load %arg5[%c11, %c0_73] : memref<22x128xf32, #tpu.memory_space<vmem>>, vector<1x32xf32>
    %206 = vector.broadcast %205 : vector<1x32xf32> to vector<16x32xf32>
    %207 = arith.addf %204, %206 : vector<16x32xf32>
    %208 = arith.addf %157, %207 : vector<16x32xf32>
    %c12 = arith.constant 12 : index
    %c0_74 = arith.constant 0 : index
    %209 = vector.load %arg5[%c12, %c0_74] : memref<22x128xf32, #tpu.memory_space<vmem>>, vector<1x32xf32>
    %c13 = arith.constant 13 : index
    %c0_75 = arith.constant 0 : index
    %210 = vector.load %arg5[%c13, %c0_75] : memref<22x128xf32, #tpu.memory_space<vmem>>, vector<1x32xf32>
    %cst_76 = arith.constant dense<0.000000e+00> : vector<16xf32>
    %211 = vector.multi_reduction <add>, %208, %cst_76 [1] : vector<16x32xf32> to vector<16xf32>
    %212 = vector.shape_cast %211 : vector<16xf32> to vector<16x1xf32>
    %cst_77 = arith.constant 3.200000e+01 : f32
    %213 = vector.broadcast %cst_77 : f32 to vector<16x1xf32>
    %214 = arith.divf %212, %213 : vector<16x1xf32>
    %215 = vector.broadcast %214 : vector<16x1xf32> to vector<16x32xf32>
    %216 = arith.subf %208, %215 : vector<16x32xf32>
    %217 = arith.mulf %216, %216 : vector<16x32xf32>
    %cst_78 = arith.constant dense<0.000000e+00> : vector<16xf32>
    %218 = vector.multi_reduction <add>, %217, %cst_78 [1] : vector<16x32xf32> to vector<16xf32>
    %219 = vector.shape_cast %218 : vector<16xf32> to vector<16x1xf32>
    %cst_79 = arith.constant 3.200000e+01 : f32
    %220 = vector.broadcast %cst_79 : f32 to vector<16x1xf32>
    %221 = arith.divf %219, %220 : vector<16x1xf32>
    %cst_80 = arith.constant 9.99999996E-13 : f32
    %222 = vector.broadcast %cst_80 : f32 to vector<16x1xf32>
    %223 = arith.addf %221, %222 : vector<16x1xf32>
    %224 = math.rsqrt %223 : vector<16x1xf32>
    %225 = vector.broadcast %214 : vector<16x1xf32> to vector<16x32xf32>
    %226 = arith.subf %208, %225 : vector<16x32xf32>
    %227 = vector.broadcast %224 : vector<16x1xf32> to vector<16x32xf32>
    %228 = arith.mulf %226, %227 : vector<16x32xf32>
    %229 = vector.broadcast %209 : vector<1x32xf32> to vector<16x32xf32>
    %230 = arith.mulf %228, %229 : vector<16x32xf32>
    %231 = vector.broadcast %210 : vector<1x32xf32> to vector<16x32xf32>
    %232 = arith.addf %230, %231 : vector<16x32xf32>
    %cst_81 = arith.constant dense<0.000000e+00> : vector<16x64xf32>
    %233 = tpu.matmul %232, %162, %cst_81 {dimension_numbers = #tpu.dot_dimension_numbers<[1], [0], [0], [1], [0, 0, 1, 1], [], []>} : vector<16x32xf32>, vector<32x64xf32>, vector<16x64xf32> -> vector<16x64xf32>
    %c14 = arith.constant 14 : index
    %c0_82 = arith.constant 0 : index
    %234 = vector.load %arg5[%c14, %c0_82] : memref<22x128xf32, #tpu.memory_space<vmem>>, vector<1x64xf32>
    %235 = vector.broadcast %234 : vector<1x64xf32> to vector<16x64xf32>
    %236 = arith.addf %233, %235 : vector<16x64xf32>
    %cst_83 = arith.constant 5.000000e-01 : f32
    %237 = vector.broadcast %cst_83 : f32 to vector<16x64xf32>
    %238 = arith.mulf %237, %236 : vector<16x64xf32>
    %cst_84 = arith.constant 4.471500e-02 : f32
    %239 = vector.broadcast %cst_84 : f32 to vector<16x64xf32>
    %240 = arith.mulf %239, %236 : vector<16x64xf32>
    %241 = arith.mulf %240, %236 : vector<16x64xf32>
    %242 = arith.mulf %241, %236 : vector<16x64xf32>
    %243 = arith.addf %236, %242 : vector<16x64xf32>
    %cst_85 = arith.constant 0.797884583 : f32
    %244 = vector.broadcast %cst_85 : f32 to vector<16x64xf32>
    %245 = arith.mulf %244, %243 : vector<16x64xf32>
    %246 = math.tanh %245 : vector<16x64xf32>
    %cst_86 = arith.constant 1.000000e+00 : f32
    %247 = vector.broadcast %cst_86 : f32 to vector<16x64xf32>
    %248 = arith.addf %247, %246 : vector<16x64xf32>
    %249 = arith.mulf %238, %248 : vector<16x64xf32>
    %c1_87 = arith.constant 1 : index
    %c0_88 = arith.constant 0 : index
    %c0_89 = arith.constant 0 : index
    %250 = vector.load %arg7[%c1_87, %c0_88, %c0_89] : memref<2x64x32xf32, #tpu.memory_space<vmem>>, vector<1x64x32xf32>
    %251 = vector.shape_cast %250 : vector<1x64x32xf32> to vector<64x32xf32>
    %cst_90 = arith.constant dense<0.000000e+00> : vector<16x32xf32>
    %252 = tpu.matmul %249, %251, %cst_90 {dimension_numbers = #tpu.dot_dimension_numbers<[1], [0], [0], [1], [0, 0, 1, 1], [], []>} : vector<16x64xf32>, vector<64x32xf32>, vector<16x32xf32> -> vector<16x32xf32>
    %c15 = arith.constant 15 : index
    %c0_91 = arith.constant 0 : index
    %253 = vector.load %arg5[%c15, %c0_91] : memref<22x128xf32, #tpu.memory_space<vmem>>, vector<1x32xf32>
    %254 = vector.broadcast %253 : vector<1x32xf32> to vector<16x32xf32>
    %255 = arith.addf %252, %254 : vector<16x32xf32>
    %256 = arith.addf %232, %255 : vector<16x32xf32>
    %c16 = arith.constant 16 : index
    %c0_92 = arith.constant 0 : index
    %257 = vector.load %arg5[%c16, %c0_92] : memref<22x128xf32, #tpu.memory_space<vmem>>, vector<1x32xf32>
    %c17 = arith.constant 17 : index
    %c0_93 = arith.constant 0 : index
    %258 = vector.load %arg5[%c17, %c0_93] : memref<22x128xf32, #tpu.memory_space<vmem>>, vector<1x32xf32>
    %cst_94 = arith.constant dense<0.000000e+00> : vector<16xf32>
    %259 = vector.multi_reduction <add>, %256, %cst_94 [1] : vector<16x32xf32> to vector<16xf32>
    %260 = vector.shape_cast %259 : vector<16xf32> to vector<16x1xf32>
    %cst_95 = arith.constant 3.200000e+01 : f32
    %261 = vector.broadcast %cst_95 : f32 to vector<16x1xf32>
    %262 = arith.divf %260, %261 : vector<16x1xf32>
    %263 = vector.broadcast %262 : vector<16x1xf32> to vector<16x32xf32>
    %264 = arith.subf %256, %263 : vector<16x32xf32>
    %265 = arith.mulf %264, %264 : vector<16x32xf32>
    %cst_96 = arith.constant dense<0.000000e+00> : vector<16xf32>
    %266 = vector.multi_reduction <add>, %265, %cst_96 [1] : vector<16x32xf32> to vector<16xf32>
    %267 = vector.shape_cast %266 : vector<16xf32> to vector<16x1xf32>
    %cst_97 = arith.constant 3.200000e+01 : f32
    %268 = vector.broadcast %cst_97 : f32 to vector<16x1xf32>
    %269 = arith.divf %267, %268 : vector<16x1xf32>
    %cst_98 = arith.constant 9.99999996E-13 : f32
    %270 = vector.broadcast %cst_98 : f32 to vector<16x1xf32>
    %271 = arith.addf %269, %270 : vector<16x1xf32>
    %272 = math.rsqrt %271 : vector<16x1xf32>
    %273 = vector.broadcast %262 : vector<16x1xf32> to vector<16x32xf32>
    %274 = arith.subf %256, %273 : vector<16x32xf32>
    %275 = vector.broadcast %272 : vector<16x1xf32> to vector<16x32xf32>
    %276 = arith.mulf %274, %275 : vector<16x32xf32>
    %277 = vector.broadcast %257 : vector<1x32xf32> to vector<16x32xf32>
    %278 = arith.mulf %276, %277 : vector<16x32xf32>
    %279 = vector.broadcast %258 : vector<1x32xf32> to vector<16x32xf32>
    %280 = arith.addf %278, %279 : vector<16x32xf32>
    %c0_99 = arith.constant 0 : index
    %c0_100 = arith.constant 0 : index
    %281 = vector.load %arg8[%c0_99, %c0_100] : memref<32x160xf32, #tpu.memory_space<vmem>>, vector<32x160xf32>
    %282 = vector.extract_strided_slice %281 {offsets = [0, 0], sizes = [32, 32], strides = [1, 1]} : vector<32x160xf32> to vector<32x32xf32>
    %283 = vector.extract_strided_slice %281 {offsets = [0, 32], sizes = [32, 128], strides = [1, 1]} : vector<32x160xf32> to vector<32x128xf32>
    %cst_101 = arith.constant dense<0.000000e+00> : vector<16x32xf32>
    %284 = tpu.matmul %280, %282, %cst_101 {dimension_numbers = #tpu.dot_dimension_numbers<[1], [0], [0], [1], [0, 0, 1, 1], [], []>} : vector<16x32xf32>, vector<32x32xf32>, vector<16x32xf32> -> vector<16x32xf32>
    %c18 = arith.constant 18 : index
    %c0_102 = arith.constant 0 : index
    %285 = vector.load %arg5[%c18, %c0_102] : memref<22x128xf32, #tpu.memory_space<vmem>>, vector<1x32xf32>
    %286 = vector.broadcast %285 : vector<1x32xf32> to vector<16x32xf32>
    %287 = arith.addf %284, %286 : vector<16x32xf32>
    %288 = math.tanh %287 : vector<16x32xf32>
    %cst_103 = arith.constant dense<0.000000e+00> : vector<16x128xf32>
    %289 = tpu.matmul %288, %283, %cst_103 {dimension_numbers = #tpu.dot_dimension_numbers<[1], [0], [0], [1], [0, 0, 1, 1], [], []>} : vector<16x32xf32>, vector<32x128xf32>, vector<16x128xf32> -> vector<16x128xf32>
    %c19 = arith.constant 19 : index
    %c0_104 = arith.constant 0 : index
    %290 = vector.load %arg5[%c19, %c0_104] : memref<22x128xf32, #tpu.memory_space<vmem>>, vector<1x128xf32>
    %291 = vector.broadcast %290 : vector<1x128xf32> to vector<16x128xf32>
    %292 = arith.addf %289, %291 : vector<16x128xf32>
    %cst_105 = arith.constant 0.000000e+00 : f32
    %293 = vector.broadcast %cst_105 : f32 to vector<16x128xf32>
    %294 = arith.maximumf %292, %293 : vector<16x128xf32>
    %c0_106 = arith.constant 0 : index
    %c0_107 = arith.constant 0 : index
    %295 = vector.load %arg9[%c0_106, %c0_107] : memref<128x64xf32, #tpu.memory_space<vmem>>, vector<128x64xf32>
    %cst_108 = arith.constant dense<0.000000e+00> : vector<16x64xf32>
    %296 = tpu.matmul %294, %295, %cst_108 {dimension_numbers = #tpu.dot_dimension_numbers<[1], [0], [0], [1], [0, 0, 1, 1], [], []>} : vector<16x128xf32>, vector<128x64xf32>, vector<16x64xf32> -> vector<16x64xf32>
    %c20 = arith.constant 20 : index
    %c0_109 = arith.constant 0 : index
    %297 = vector.load %arg5[%c20, %c0_109] : memref<22x128xf32, #tpu.memory_space<vmem>>, vector<1x64xf32>
    %298 = vector.broadcast %297 : vector<1x64xf32> to vector<16x64xf32>
    %299 = arith.addf %296, %298 : vector<16x64xf32>
    %cst_110 = arith.constant 0.000000e+00 : f32
    %300 = vector.broadcast %cst_110 : f32 to vector<16x64xf32>
    %301 = arith.maximumf %299, %300 : vector<16x64xf32>
    %c0_111 = arith.constant 0 : index
    %c0_112 = arith.constant 0 : index
    %302 = vector.load %arg10[%c0_111, %c0_112] : memref<64x128xf32, #tpu.memory_space<vmem>>, vector<64x128xf32>
    %cst_113 = arith.constant dense<0.000000e+00> : vector<16x128xf32>
    %303 = tpu.matmul %301, %302, %cst_113 {dimension_numbers = #tpu.dot_dimension_numbers<[1], [0], [0], [1], [0, 0, 1, 1], [], []>} : vector<16x64xf32>, vector<64x128xf32>, vector<16x128xf32> -> vector<16x128xf32>
    %c21 = arith.constant 21 : index
    %c0_114 = arith.constant 0 : index
    %304 = vector.load %arg5[%c21, %c0_114] : memref<22x128xf32, #tpu.memory_space<vmem>>, vector<1x128xf32>
    %305 = vector.broadcast %304 : vector<1x128xf32> to vector<16x128xf32>
    %306 = arith.addf %303, %305 : vector<16x128xf32>
    %cst_115 = arith.constant dense<0xFF800000> : vector<16xf32>
    %307 = vector.multi_reduction <maximumf>, %306, %cst_115 [1] : vector<16x128xf32> to vector<16xf32>
    %308 = vector.shape_cast %307 : vector<16xf32> to vector<16x1xf32>
    %309 = vector.broadcast %308 : vector<16x1xf32> to vector<16x128xf32>
    %310 = arith.subf %306, %309 : vector<16x128xf32>
    %311 = math.exp %310 : vector<16x128xf32>
    %cst_116 = arith.constant dense<0.000000e+00> : vector<16xf32>
    %312 = vector.multi_reduction <add>, %311, %cst_116 [1] : vector<16x128xf32> to vector<16xf32>
    %313 = vector.shape_cast %312 : vector<16xf32> to vector<16x1xf32>
    %314 = vector.broadcast %313 : vector<16x1xf32> to vector<16x128xf32>
    %315 = arith.divf %311, %314 : vector<16x128xf32>
    %c0_117 = arith.constant 0 : index
    %c0_118 = arith.constant 0 : index
    %316 = vector.load %arg11[%c0_117, %c0_118] : memref<16x128xf32, #tpu.memory_space<vmem>>, vector<16x128xf32>
    tpu.vector_store %arg11[%c0_117, %c0_118], %315 {strides = array<i32>} : memref<16x128xf32, #tpu.memory_space<vmem>>, vector<16x128xf32>,
    return
  }
  func.func @transform_0(%arg0: i32) -> (i32, i32) {
    %c0_i32 = arith.constant 0 : i32
    %c0_i32_0 = arith.constant 0 : i32
    %c0_i32_1 = arith.constant 0 : i32
    return %c0_i32, %c0_i32_0 : i32, i32
  }
  func.func @transform_1(%arg0: i32) -> (i32, i32) {
    %c0_i32 = arith.constant 0 : i32
    %c0_i32_0 = arith.constant 0 : i32
    %c0_i32_1 = arith.constant 0 : i32
    return %c0_i32, %c0_i32_0 : i32, i32
  }
  func.func @transform_2(%arg0: i32) -> (i32, i32) {
    %c0_i32 = arith.constant 0 : i32
    %c0_i32_0 = arith.constant 0 : i32
    %c0_i32_1 = arith.constant 0 : i32
    return %c0_i32, %c0_i32_0 : i32, i32
  }
  func.func @transform_3(%arg0: i32) -> (i32, i32) {
    %c0_i32 = arith.constant 0 : i32
    %c0_i32_0 = arith.constant 0 : i32
    %c0_i32_1 = arith.constant 0 : i32
    return %c0_i32, %c0_i32_0 : i32, i32
  }
  func.func @transform_4(%arg0: i32) -> (i32, i32) {
    %c0_i32 = arith.constant 0 : i32
    %c0_i32_0 = arith.constant 0 : i32
    %c0_i32_1 = arith.constant 0 : i32
    return %c0_i32, %c0_i32_0 : i32, i32
  }
  func.func @transform_5(%arg0: i32) -> (i32, i32, i32) {
    %c0_i32 = arith.constant 0 : i32
    %c0_i32_0 = arith.constant 0 : i32
    %c0_i32_1 = arith.constant 0 : i32
    %c0_i32_2 = arith.constant 0 : i32
    return %c0_i32, %c0_i32_0, %c0_i32_1 : i32, i32, i32
  }
  func.func @transform_6(%arg0: i32) -> (i32, i32, i32) {
    %c0_i32 = arith.constant 0 : i32
    %c0_i32_0 = arith.constant 0 : i32
    %c0_i32_1 = arith.constant 0 : i32
    %c0_i32_2 = arith.constant 0 : i32
    return %c0_i32, %c0_i32_0, %c0_i32_1 : i32, i32, i32
  }
  func.func @transform_7(%arg0: i32) -> (i32, i32) {
    %c0_i32 = arith.constant 0 : i32
    %c0_i32_0 = arith.constant 0 : i32
    %c0_i32_1 = arith.constant 0 : i32
    return %c0_i32, %c0_i32_0 : i32, i32
  }
  func.func @transform_8(%arg0: i32) -> (i32, i32) {
    %c0_i32 = arith.constant 0 : i32
    %c0_i32_0 = arith.constant 0 : i32
    %c0_i32_1 = arith.constant 0 : i32
    return %c0_i32, %c0_i32_0 : i32, i32
  }
  func.func @transform_9(%arg0: i32) -> (i32, i32) {
    %c0_i32 = arith.constant 0 : i32
    %c0_i32_0 = arith.constant 0 : i32
    %c0_i32_1 = arith.constant 0 : i32
    return %c0_i32, %c0_i32_0 : i32, i32
  }
  func.func @transform_10(%arg0: i32) -> (i32, i32) {
    %c0_i32 = arith.constant 0 : i32
    %c0_i32_0 = arith.constant 0 : i32
    %c0_i32_1 = arith.constant 0 : i32
    return %c0_i32, %c0_i32_0 : i32, i32
  }
}

</mosaic_0001>

<bundles_post_ra>
// kernel: text_classifier_forward.1
= control target key start
LH: loop header
LB: loop body
LE: loop exit
PB: predicated region body
PF: predicated region fallthrough
CT: control target
= control target key end

     0   :  { %v1610_v0 = vmov 0   ;;  %v37_v19 = vlaneseq  ;;  %v1611_v22 = vmov 1.0   ;;  %vm94_vm2 = vcmask 261120   ;;  %s1613_s23 = smov 80   ;;  %s1614_s24 = smov 112   ;;  %s2217_s0 = inlined_call_operand.vmem [shape: s32[16,1], index: 0, kind: input, shape index: {}]   ;;  %s2218_s2 = inlined_call_operand.vmem [shape: f32[128,32], index: 2, kind: input, shape index: {}]   ;;  %s2219_s3 = inlined_call_operand.vmem [shape: f32[16,32], index: 3, kind: input, shape index: {}]   ;;  %s2220_s4 = inlined_call_operand.vmem [shape: f32[22,128], index: 4, kind: input, shape index: {}]   ;;  %s2221_s5 = inlined_call_operand.vmem [shape: f32[2,32,192], index: 5, kind: input, shape index: {}]   ;;  %s2222_s1 = inlined_call_operand.vmem [shape: f32[16,16], index: 1, kind: input, shape index: {}]   ;;  %s2223_s6 = inlined_call_operand.vmem [shape: f32[2,64,32], index: 6, kind: input, shape index: {}]   ;;  %s2224_s7 = inlined_call_operand.vmem [shape: f32[32,160], index: 7, kind: input, shape index: {}]   ;;  %s2225_s8 = inlined_call_operand.vmem [shape: f32[128,64], index: 8, kind: input, shape index: {}]   ;;  %s2226_s9 = inlined_call_operand.vmem [shape: f32[64,128], index: 9, kind: input, shape index: {}]   ;;  %s2227_s10 = inlined_call_operand.vmem [shape: f32[16,128], index: 10, kind: output, shape index: {}]  }
   0x1   :  { %1453 = vset.pattern.permute.xlu0 %v1610_v0  ;;  %v35_v1 = vld [vmem:[%s2217_s0] sm:$0xff]  ;;  %v66_v2 = vld [vmem:[%s2218_s2 + $0x78] sm:$0xff]  ;;  %v65_v3 = vld [vmem:[%s2218_s2 + $0x70] sm:$0xff]  ;;  %v1612_v32 = vmov 32.0   ;;  %s1615_s25 = smov 96   ;;  %vm199_vm10 = vcmask 130048  }
   0x2   :  { %40 = vperm.xlu0 %1453, %v35_v1   ;;  %69 = vmatpush.msra.mxu0 %v66_v2  ;;  %v64_v4 = vld [vmem:[%s2218_s2 + $0x68] sm:$0xff]  ;;  %v63_v5 = vld [vmem:[%s2218_s2 + $0x60] sm:$0xff]  ;;  %v62_v7 = vld [vmem:[%s2218_s2 + $0x58] sm:$0xff]  ;;  %v38_v20 = vand.u32 127, %v37_v19  ;;  %1536 = vrcp.f32 %v1612_v32  ;;  %s1618_s30 = smov 32  }
   0x3   :  { %v36_v6 = vld [vmem:[%s2217_s0 + $0x8] sm:$0xff]  ;;  %v61_v8 = vld [vmem:[%s2218_s2 + $0x50] sm:$0xff]  ;;  %v59_v10 = vld [vmem:[%s2218_s2 + $0x40] sm:$0xff] }
   0x4   :  { %70 = vmatpush.msra.mxu0 %v65_v3  ;;  %v60_v9 = vld [vmem:[%s2218_s2 + $0x48] sm:$0xff]  ;;  %v58_v11 = vld [vmem:[%s2218_s2 + $0x38] sm:$0xff]  ;;  %v57_v12 = vld [vmem:[%s2218_s2 + $0x30] sm:$0xff] }
   0x5   :  { %v56_v13 = vld [vmem:[%s2218_s2 + $0x28] sm:$0xff]  ;;  %v55_v14 = vld [vmem:[%s2218_s2 + $0x20] sm:$0xff]  ;;  %v54_v15 = vld [vmem:[%s2218_s2 + $0x18] sm:$0xff] }
   0x6   :  { %71 = vmatpush.msra.mxu0 %v64_v4  ;;  %v53_v16 = vld [vmem:[%s2218_s2 + $0x10] sm:$0xff]  ;;  %v52_v17 = vld [vmem:[%s2218_s2 + $0x8] sm:$0xff]  ;;  %v51_v18 = vld [vmem:[%s2218_s2] sm:$0xff]  ;;  %s1617_s2 = smov 64  }
   0x7   :  { %v67_v24 = vld [vmem:[%s2219_s3] sm:$0xff]  ;;  %v68_v28 = vld [vmem:[%s2219_s3 + $0x8] sm:$0xff]  ;;  %v1746_v49 = vld [vmem:[%s2221_s5 + $0x30] sm:$0xff]  ;;  %s1619_s3 = smov 16  }
   0x8   :  { %72 = vmatpush.msra.mxu0 %v63_v5  ;;  %v1537_v33 = vpop.eup %1536  ;;  %182 = vmatpush.msra.mxu1 %v1746_v49  ;;  %v1752_v50 = vld [vmem:[%s2221_s5 + $0x20] sm:$0xff]  ;;  %v1758_v51 = vld [vmem:[%s2221_s5 + $0x10] sm:$0xff] }
   0x9   :  { %v102_v34 = vmul.f32 32.0, %v1537_v33  ;;  %vm106_vm3 = vweird.f32 %v1537_v33  ;;  %v1764_v52 = vld [vmem:[%s2221_s5] sm:$0xff]  ;;  %v1464_v53 = vpack.i.bf16 %v1752_v50, %v1746_v49 }
   0xa   :  { %43 = vperm.xlu0 %1453, %v36_v6   ;;  %73 = vmatpush.msra.mxu0 %v62_v7  ;;  %v1469_v54 = vpack.i.bf16 %v1764_v52, %v1758_v51  ;;  %v1514_v5 = vld [vmem:[%s2220_s4] ss:$0 sm:$0xff]  ;;  %v1516_v19 = vld [vmem:[%s2220_s4 + $0x2] ss:$0 sm:$0xff] }
   0xb   :  { %v103_v35 = vsub.f32 1.0, %v102_v34  ;;  %183 = vmatpush.msra.mxu1 %v1752_v50 }
   0xc   :  { %74 = vmatpush.msra.mxu0 %v61_v8 }
   0xd   :  { %v104_v36 = vmul.f32 %v1537_v33, %v103_v35  ;;  %184 = vmatpush.msra.mxu1 %v1758_v51 }
   0xe   :  { %75 = vmatpush.msra.mxu0 %v60_v9  ;;  %v1515_v9 = vld [vmem:[%s2220_s4 + $0x1] ss:$0 sm:$0xff] }
   0xf   :  { %v105_v37 = vadd.f32 %v1537_v33, %v104_v36  ;;  %185 = vmatpush.msra.mxu1 %v1764_v52  ;;  %v1814_v36 = vld [vmem:[%s2222_s1 + $0x8] sm:$0xff] }
  0x10   :  { %76 = vmatpush.msra.mxu0 %v59_v10 }
  0x11   :  { %v1737_v38 = vsel %vm106_vm3, %v1537_v33, %v105_v37 }
  0x12   :  { %77 = vmatpush.msra.mxu0 %v58_v11 }
  0x14   :  { %78 = vmatpush.msra.mxu0 %v57_v12 }
  0x16   :  { %79 = vmatpush.msra.mxu0 %v56_v13 }
  0x18   :  { %80 = vmatpush.msra.mxu0 %v55_v14 }
  0x1a   :  { %81 = vmatpush.msra.mxu0 %v54_v15 }
  0x1c   :  { %82 = vmatpush.msra.mxu0 %v53_v16 }
  0x1e   :  { %83 = vmatpush.msra.mxu0 %v52_v17 }
  0x20   :  { %84 = vmatpush.msra.mxu0 %v51_v18 }
  0x74   :  { %v41_v21 = vpop.permute.xlu0 %40 }
  0x75   :  { %vm45_vm0 = vcmp.eq.s32.totalorder %v38_v20, %v41_v21 }
  0x76   :  { %1379 = vmatmul.msk.f32.vlgmr.msra.gmra.mxu0 %vm45_vm0, %v1611_v22 }
  0x7c   :  { %v44_v23 = vpop.permute.xlu0 %43 }
  0x7d   :  { %vm46_vm1 = vcmp.eq.s32.totalorder %v38_v20, %v44_v23 }
  0x7e   :  { %1380 = vmatmul.msk.f32.gmra.mxu0 %vm46_vm1, %v1611_v22  ;;  %vm562_vm1 = vcmask 523264  }
  0xf3   :  { %v86_v25 = vpop.f32.mrf.mxu0 }
  0xf4   :  { %v87_v26 = vadd.f32 %v86_v25, %v67_v24 }
  0xf6   :  { %v95_v27 = vsel %vm94_vm2, %v87_v26, 0.0 }
  0xf7   :  { %96 = vadd.xlane.f32.xlu1 %v95_v27 }
  0xfb   :  { %v89_v29 = vpop.f32.mrf.mxu0 }
  0xfc   :  { %v90_v30 = vadd.f32 %v89_v29, %v68_v28 }
  0xfe   :  { %v98_v31 = vsel %vm94_vm2, %v90_v30, 0.0 }
  0xff   :  { %99 = vadd.xlane.f32.xlu1 %v98_v31  ;;  %v1807_v31 = vld [vmem:[%s2222_s1] sm:$0xff]  ;;  %s1616_s1 = smov 48  }
 0x16a   :  { %v97_v39 = vpop.xlane.xlu1 %96 }
 0x16b   :  { %v108_v40 = vmul.f32 %v1737_v38, %v97_v39 }
 0x16d   :  { %v110_v41 = vsub.f32 %v87_v26, %v108_v40 }
 0x16f   :  { %v112_v42 = vmul.f32 %v110_v41, %v110_v41 }
 0x171   :  { %v114_v43 = vsel %vm94_vm2, %v112_v42, 0.0 }
 0x172   :  { %115 = vadd.xlane.f32.xlu2 %v114_v43  ;;  %v100_v44 = vpop.xlane.xlu1 %99 }
 0x173   :  { %v109_v45 = vmul.f32 %v1737_v38, %v100_v44 }
 0x175   :  { %v111_v46 = vsub.f32 %v90_v30, %v109_v45 }
 0x177   :  { %v113_v47 = vmul.f32 %v111_v46, %v111_v46 }
 0x179   :  { %v117_v48 = vsel %vm94_vm2, %v113_v47, 0.0 }
 0x17a   :  { %118 = vadd.xlane.f32.xlu2 %v117_v48 }
 0x1e5   :  { %v116_v55 = vpop.xlane.xlu2 %115 }
 0x1e6   :  { %v120_v56 = vmul.f32 %v116_v55, %v1737_v38 }
 0x1e8   :  { %v122_v57 = vadd.f32 1e-12, %v120_v56 }
 0x1ea   :  { %1538 = vrsqrt.f32 %v122_v57  ;;  %vm130_vm5 = vweird.f32 %v122_v57 }
 0x1ed   :  { %v119_v58 = vpop.xlane.xlu2 %118 }
 0x1ee   :  { %v121_v59 = vmul.f32 %v119_v58, %v1737_v38 }
 0x1f0   :  { %v1539_v60 = vpop.eup %1538  ;;  %v123_v61 = vadd.f32 1e-12, %v121_v59 }
 0x1f1   :  { %v125_v62 = vmul.f32 %v1539_v60, %v122_v57  ;;  %vm131_vm4 = vweird.f32 %v1539_v60 }
 0x1f2   :  { %1540 = vrsqrt.f32 %v123_v61  ;;  %vm132_vm6 = vmor %vm130_vm5, %vm131_vm4  ;;  %vm140_vm8 = vweird.f32 %v123_v61 }
 0x1f3   :  { %v126_v63 = vmul.f32 %v1539_v60, %v125_v62 }
 0x1f5   :  { %v127_v0 = vmul.f32 0.5, %v126_v63 }
 0x1f7   :  { %v128_v1 = vsub.f32 1.5, %v127_v0 }
 0x1f8   :  { %v1541_v2 = vpop.eup %1540 }
 0x1f9   :  { %v129_v3 = vmul.f32 %v1539_v60, %v128_v1  ;;  %v135_v4 = vmul.f32 %v1541_v2, %v123_v61  ;;  %vm141_vm7 = vweird.f32 %v1541_v2 }
 0x1fa   :  { %vm142_vm9 = vmor %vm140_vm8, %vm141_vm7 }
 0x1fb   :  { %v133_v6 = vsel %vm132_vm6, %v1539_v60, %v129_v3  ;;  %v136_v7 = vmul.f32 %v1541_v2, %v135_v4 }
 0x1fc   :  { %v144_v8 = vmul.f32 %v133_v6, %v110_v41 }
 0x1fd   :  { %v137_v10 = vmul.f32 0.5, %v136_v7 }
 0x1fe   :  { %v147_v11 = vmul.f32 %v1514_v5, %v144_v8 }
 0x1ff   :  { %v138_v12 = vsub.f32 1.5, %v137_v10 }
 0x200   :  { %v1779_v13 = vadd.f32 %v1515_v9, %v147_v11 }
 0x201   :  { %v139_v14 = vmul.f32 %v1541_v2, %v138_v12 }
 0x202   :  { %1381 = vmatmul.msk.f32.vlgmr.msra.gmra.mxu1 %vm94_vm2, %v1779_v13 }
 0x203   :  { %v143_v15 = vsel %vm142_vm9, %v1541_v2, %v139_v14 }
 0x204   :  { %v145_v16 = vmul.f32 %v143_v15, %v111_v46 }
 0x206   :  { %v148_v17 = vmul.f32 %v1514_v5, %v145_v16 }
 0x208   :  { %v1783_v18 = vadd.f32 %v1515_v9, %v148_v17 }
 0x20a   :  { %1382 = vmatmul.msk.f32.gmra.mxu1 %vm94_vm2, %v1783_v18 }
 0x27f   :  { %v187_v20 = vpop.f32.mrf.mxu1 }
 0x280   :  { %v188_v21 = vadd.f32 %v1516_v19, %v187_v20 }
 0x282   :  { %296 = vrot.lane.b32.xlu1 %v188_v21, %s1613_s23  ;;  %292 = vrot.lane.b32.xlu2 %v188_v21, %s1614_s24 }
 0x287   :  { %v190_v22 = vpop.f32.mrf.mxu1 }
 0x288   :  { %v191_v23 = vadd.f32 %v1516_v19, %v190_v22 }
 0x28a   :  { %298 = vrot.lane.b32.xlu0 %v191_v23, %s1613_s23  ;;  %v1454_v55 = vpack.i.bf16 %v188_v21, %v191_v23 }
 0x292   :  { %294 = vrot.lane.b32.xlu0 %v191_v23, %s1614_s24 }
 0x29a   :  { %197 = vrot.lane.b32.xlu0 %v191_v23, %s1615_s25 }
 0x2a2   :  { %195 = vrot.lane.b32.xlu0 %v188_v21, %s1615_s25 }
 0x2dc   :  { %v293_v26 = vpop.permute.xlu2 %292 }
 0x2f4   :  { %v297_v25 = vpop.permute.xlu1 %296 }
 0x2fc   :  { %v299_v24 = vpop.permute.xlu0 %298 }
 0x2fd   :  { %1389 = vmatpush.xpose.msk.msra.mxu3 %vm199_vm10, %v299_v24 }
 0x301   :  { %1390 = vmatpush.xpose.msk.msra.mxu3 %vm199_vm10, %v297_v25 }
 0x304   :  { %v295_v27 = vpop.permute.xlu0 %294  ;;  %1391 = vmatmul.msk.f32.vlgmr.msra.gmra.mxu3 %vm199_vm10, %v293_v26 }
 0x30c   :  { %v198_v28 = vpop.permute.xlu0 %197  ;;  %1392 = vmatmul.msk.f32.gmra.mxu3 %vm199_vm10, %v295_v27 }
 0x30d   :  { %1383 = vmatpush.xpose.msk.msra.mxu2 %vm199_vm10, %v198_v28 }
 0x314   :  { %v196_v29 = vpop.permute.xlu0 %195 }
 0x315   :  { %1384 = vmatpush.xpose.msk.msra.mxu2 %vm199_vm10, %v196_v29 }
 0x318   :  { %1385 = vmatmul.msk.f32.vlgmr.msra.gmra.mxu2 %vm199_vm10, %v188_v21 }
 0x320   :  { %1386 = vmatmul.msk.f32.gmra.mxu2 %vm199_vm10, %v191_v23 }
 0x387   :  { %v325_v30 = vpop.f32.mrf.mxu3 }
 0x388   :  { %v331_v32 = vmul.f32 0.25, %v325_v30 }
 0x38a   :  { %v333_v33 = vadd.f32 %v331_v32, %v1807_v31 }
 0x38c   :  { %v335_v34 = vsel %vm199_vm10, %v333_v33, -inf }
 0x38d   :  { %336 = vmax.xlane.f32.xlu2 %v335_v34 }
 0x38f   :  { %v328_v35 = vpop.f32.mrf.mxu3 }
 0x390   :  { %v332_v37 = vmul.f32 0.25, %v328_v35 }
 0x392   :  { %v334_v39 = vadd.f32 %v332_v37, %v1814_v36 }
 0x394   :  { %v338_v40 = vsel %vm199_vm10, %v334_v39, -inf }
 0x395   :  { %339 = vmax.xlane.f32.xlu1 %v338_v40 }
 0x39b   :  { %v225_v41 = vpop.f32.mrf.mxu2 }
 0x39c   :  { %v231_v42 = vmul.f32 0.25, %v225_v41 }
 0x39e   :  { %v233_v43 = vadd.f32 %v231_v42, %v1807_v31 }
 0x3a0   :  { %v235_v44 = vsel %vm199_vm10, %v233_v43, -inf }
 0x3a1   :  { %236 = vmax.xlane.f32.xlu0 %v235_v44 }
 0x3a3   :  { %v228_v45 = vpop.f32.mrf.mxu2 }
 0x3a4   :  { %v232_v46 = vmul.f32 0.25, %v228_v45 }
 0x3a6   :  { %v234_v47 = vadd.f32 %v232_v46, %v1814_v36 }
 0x3a8   :  { %v238_v48 = vsel %vm199_vm10, %v234_v47, -inf }
 0x3a9   :  { %239 = vmax.xlane.f32.xlu2 %v238_v48 }
 0x3c1   :  { %1455 = vrot.lane.b32.xlu2 %v1454_v55, %s1616_s1 }
 0x3c9   :  { %1470 = vrot.lane.b32.xlu2 %v1469_v54, %s1618_s30 }
 0x400   :  { %v337_v56 = vpop.xlane.xlu2 %336 }
 0x401   :  { %v341_v57 = vsub.f32 %v333_v33, %v337_v56 }
 0x403   :  { %v343_v58 = vmul.f32 1.442695, %v341_v57 }
 0x405   :  { %1542 = vpow2.f32 %v343_v58 }
 0x408   :  { %v340_v59 = vpop.xlane.xlu1 %339 }
 0x409   :  { %v342_v60 = vsub.f32 %v334_v39, %v340_v59 }
 0x40b   :  { %v1543_v61 = vpop.eup %1542  ;;  %v345_v62 = vmul.f32 1.442695, %v342_v60 }
 0x40c   :  { %v347_v63 = vsel %vm199_vm10, %v1543_v61, 0.0 }
 0x40d   :  { %1544 = vpow2.f32 %v345_v62  ;;  %348 = vadd.xlane.f32.xlu1 %v347_v63 }
 0x413   :  { %v1545_v0 = vpop.eup %1544 }
 0x414   :  { %v237_v1 = vpop.xlane.xlu0 %236  ;;  %v350_v2 = vsel %vm199_vm10, %v1545_v0, 0.0 }
 0x415   :  { %v241_v3 = vsub.f32 %v233_v43, %v237_v1  ;;  %351 = vadd.xlane.f32.xlu0 %v350_v2  ;;  %v1517_v43 = vld [vmem:[%s2220_s4 + $0x3] ss:$0 sm:$0xff] }
 0x417   :  { %v243_v4 = vmul.f32 1.442695, %v241_v3  ;;  %v159_v3 = vld [vmem:[%s2221_s5 + $0x28] sm:$0xff] }
 0x419   :  { %1546 = vpow2.f32 %v243_v4  ;;  %v157_v4 = vld [vmem:[%s2221_s5 + $0x18] sm:$0xff] }
 0x41c   :  { %v240_v5 = vpop.xlane.xlu2 %239 }
 0x41d   :  { %v242_v6 = vsub.f32 %v234_v47, %v240_v5  ;;  %v155_v5 = vld [vmem:[%s2221_s5 + $0x8] sm:$0xff] }
 0x41f   :  { %v1547_v7 = vpop.eup %1546  ;;  %v245_v8 = vmul.f32 1.442695, %v242_v6 }
 0x420   :  { %v247_v9 = vsel %vm199_vm10, %v1547_v7, 0.0 }
 0x421   :  { %1548 = vpow2.f32 %v245_v8  ;;  %248 = vadd.xlane.f32.xlu1 %v247_v9 }
 0x424   :  { %v1456_v10 = vpop.permute.xlu2 %1455 }
 0x425   :  { %v1457_v11 = vunpack.i.l.bf16 %v1456_v10  ;;  %v1458_v14 = vunpack.i.h.bf16 %v1456_v10 }
 0x427   :  { %v1549_v12 = vpop.eup %1548  ;;  %383 = vmatpush.msrb.mxu1 %v1457_v11 }
 0x428   :  { %v250_v15 = vsel %vm199_vm10, %v1549_v12, 0.0 }
 0x429   :  { %384 = vmatpush.msrb.mxu1 %v1458_v14  ;;  %251 = vadd.xlane.f32.xlu1 %v250_v15 }
 0x42a   :  { %1460 = vrot.lane.b32.xlu0 %v1454_v55, %s1617_s2 }
 0x42c   :  { %v1471_v32 = vpop.permute.xlu2 %1470 }
 0x42d   :  { %v1472_v33 = vunpack.i.l.bf16 %v1471_v32  ;;  %v1473_v34 = vunpack.i.h.bf16 %v1471_v32  ;;  %v558_v32 = vld [vmem:[%s2223_s6 + $0x30] sm:$0xff] }
 0x442   :  { %1465 = vrot.lane.b32.xlu1 %v1464_v53, %s1618_s30 }
 0x480   :  { %v349_v16 = vpop.xlane.xlu1 %348 }
 0x481   :  { %1550 = vrcp.f32 %v349_v16 }
 0x487   :  { %v1551_v17 = vpop.eup %1550 }
 0x488   :  { %v352_v19 = vpop.xlane.xlu0 %351  ;;  %v355_v20 = vmul.f32 %v1551_v17, %v1543_v61 }
 0x489   :  { %1552 = vrcp.f32 %v352_v19 }
 0x48a   :  { %1393 = vmatmul.msk.f32.vlgmr.msrb.gmra.mxu1 %vm199_vm10, %v355_v20 }
 0x48f   :  { %v1553_v21 = vpop.eup %1552 }
 0x490   :  { %v356_v22 = vmul.f32 %v1553_v21, %v1545_v0 }
 0x492   :  { %1394 = vmatmul.msk.f32.gmra.mxu1 %vm199_vm10, %v356_v22  ;;  %v1518_v22 = vld [vmem:[%s2220_s4 + $0x4] ss:$0 sm:$0xff] }
 0x494   :  { %v249_v23 = vpop.xlane.xlu1 %248 }
 0x495   :  { %1554 = vrcp.f32 %v249_v23 }
 0x49b   :  { %v1555_v54 = vpop.eup %1554 }
 0x49c   :  { %v1461_v51 = vpop.permute.xlu0 %1460  ;;  %v252_v52 = vpop.xlane.xlu1 %251  ;;  %v255_v50 = vmul.f32 %v1555_v54, %v1547_v7  ;;  %v1519_v54 = vld [vmem:[%s2220_s4 + $0x5] ss:$0 sm:$0xff] }
 0x49d   :  { %v1462_v24 = vunpack.i.l.bf16 %v1461_v51  ;;  %1556 = vrcp.f32 %v252_v52  ;;  %v1463_v49 = vunpack.i.h.bf16 %v1461_v51 }
 0x49f   :  { %283 = vmatpush.msrb.mxu2 %v1462_v24 }
 0x4a1   :  { %284 = vmatpush.msrb.mxu2 %v1463_v49 }
 0x4a2   :  { %1387 = vmatmul.msk.f32.vlgmr.msrb.gmra.mxu2 %vm199_vm10, %v255_v50 }
 0x4a3   :  { %v1557_v53 = vpop.eup %1556 }
 0x4a4   :  { %v256_v25 = vmul.f32 %v1557_v53, %v1549_v12 }
 0x4aa   :  { %1388 = vmatmul.msk.f32.gmra.mxu2 %vm199_vm10, %v256_v25 }
 0x4b4   :  { %v1466_v28 = vpop.permute.xlu1 %1465 }
 0x4b5   :  { %v1468_v29 = vunpack.i.h.bf16 %v1466_v28  ;;  %v1467_v30 = vunpack.i.l.bf16 %v1466_v28 }
 0x4b7   :  { %438 = vmatpush.msra.mxu2 %v1467_v30  ;;  %v559_v30 = vld [vmem:[%s2223_s6 + $0x38] sm:$0xff] }
 0x4b8   :  { %577 = vmatpush.msra.mxu1 %v559_v30 }
 0x4b9   :  { %439 = vmatpush.msra.mxu2 %v1468_v29 }
 0x4ba   :  { %578 = vmatpush.msra.mxu1 %v558_v32 }
 0x4bb   :  { %440 = vmatpush.msra.mxu2 %v1472_v33  ;;  %v557_v33 = vld [vmem:[%s2223_s6 + $0x28] sm:$0xff] }
 0x4bc   :  { %579 = vmatpush.msra.mxu1 %v557_v33 }
 0x4bd   :  { %441 = vmatpush.msra.mxu2 %v1473_v34  ;;  %v556_v34 = vld [vmem:[%s2223_s6 + $0x20] sm:$0xff] }
 0x4be   :  { %580 = vmatpush.msra.mxu1 %v556_v34 }
 0x507   :  { %v386_v26 = vpop.f32.mrf.mxu1 }
 0x508   :  { %394 = vrot.lane.b32.xlu0 %v386_v26, %s1619_s3 }
 0x50f   :  { %v389_v27 = vpop.f32.mrf.mxu1 }
 0x510   :  { %396 = vrot.lane.b32.xlu2 %v389_v27, %s1619_s3 }
 0x525   :  { %v286_v35 = vpop.f32.mrf.mxu2 }
 0x52d   :  { %v289_v41 = vpop.f32.mrf.mxu2 }
 0x56a   :  { %v397_v40 = vpop.permute.xlu2 %396 }
 0x56b   :  { %v401_v42 = vsel %vm199_vm10, %v289_v41, %v397_v40  ;;  %v552_v40 = vld [vmem:[%s2223_s6] sm:$0xff] }
 0x56c   :  { %v1520_v41 = vld [vmem:[%s2220_s4 + $0x6] ss:$0 sm:$0xff] }
 0x57a   :  { %v395_v37 = vpop.permute.xlu0 %394 }
 0x57b   :  { %v400_v39 = vsel %vm199_vm10, %v286_v35, %v395_v37  ;;  %v555_v35 = vld [vmem:[%s2223_s6 + $0x18] sm:$0xff]  ;;  %v554_v37 = vld [vmem:[%s2223_s6 + $0x10] sm:$0xff] }
 0x57c   :  { %1395 = vmatmul.msk.f32.vlgmr.msra.gmra.mxu2 %vm94_vm2, %v400_v39  ;;  %581 = vmatpush.msra.mxu1 %v555_v35  ;;  %v553_v39 = vld [vmem:[%s2223_s6 + $0x8] sm:$0xff] }
 0x57e   :  { %582 = vmatpush.msra.mxu1 %v554_v37 }
 0x580   :  { %583 = vmatpush.msra.mxu1 %v553_v39 }
 0x582   :  { %584 = vmatpush.msra.mxu1 %v552_v40 }
 0x584   :  { %1396 = vmatmul.msk.f32.gmra.mxu2 %vm94_vm2, %v401_v42 }
 0x5ff   :  { %v443_v44 = vpop.f32.mrf.mxu2 }
 0x600   :  { %v444_v45 = vadd.f32 %v1517_v43, %v443_v44 }
 0x602   :  { %v449_v46 = vadd.f32 %v444_v45, %v1779_v13 }
 0x604   :  { %v453_v47 = vsel %vm94_vm2, %v449_v46, 0.0 }
 0x605   :  { %454 = vadd.xlane.f32.xlu0 %v453_v47 }
 0x607   :  { %v446_v48 = vpop.f32.mrf.mxu2 }
 0x608   :  { %v447_v55 = vadd.f32 %v1517_v43, %v446_v48 }
 0x60a   :  { %v450_v56 = vadd.f32 %v447_v55, %v1783_v18  ;;  %v161_v18 = vld [vmem:[%s2221_s5 + $0x38] sm:$0xff] }
 0x60b   :  { %523 = vmatpush.msrb.mxu3 %v161_v18 }
 0x60c   :  { %v456_v57 = vsel %vm94_vm2, %v450_v56, 0.0 }
 0x60d   :  { %457 = vadd.xlane.f32.xlu2 %v456_v57  ;;  %524 = vmatpush.msrb.mxu3 %v159_v3 }
 0x60f   :  { %525 = vmatpush.msrb.mxu3 %v157_v4  ;;  %v1521_v4 = vld [vmem:[%s2220_s4 + $0x7] ss:$0 sm:$0xff] }
 0x611   :  { %526 = vmatpush.msrb.mxu3 %v155_v5 }
 0x678   :  { %v455_v58 = vpop.xlane.xlu0 %454 }
 0x679   :  { %v459_v59 = vmul.f32 %v455_v58, %v1737_v38 }
 0x67b   :  { %v461_v60 = vsub.f32 %v449_v46, %v459_v59 }
 0x67d   :  { %v463_v61 = vmul.f32 %v461_v60, %v461_v60 }
 0x67f   :  { %v465_v62 = vsel %vm94_vm2, %v463_v61, 0.0 }
 0x680   :  { %v458_v63 = vpop.xlane.xlu2 %457  ;;  %466 = vadd.xlane.f32.xlu1 %v465_v62 }
 0x681   :  { %v460_v13 = vmul.f32 %v458_v63, %v1737_v38 }
 0x683   :  { %v462_v0 = vsub.f32 %v450_v56, %v460_v13 }
 0x685   :  { %v464_v1 = vmul.f32 %v462_v0, %v462_v0 }
 0x687   :  { %v468_v2 = vsel %vm94_vm2, %v464_v1, 0.0 }
 0x688   :  { %469 = vadd.xlane.f32.xlu0 %v468_v2 }
 0x6f3   :  { %v467_v6 = vpop.xlane.xlu1 %466 }
 0x6f4   :  { %v471_v7 = vmul.f32 %v467_v6, %v1737_v38 }
 0x6f6   :  { %v473_v8 = vadd.f32 1e-12, %v471_v7 }
 0x6f8   :  { %1558 = vrsqrt.f32 %v473_v8  ;;  %vm481_vm12 = vweird.f32 %v473_v8 }
 0x6fb   :  { %v470_v9 = vpop.xlane.xlu0 %469 }
 0x6fc   :  { %v472_v10 = vmul.f32 %v470_v9, %v1737_v38 }
 0x6fe   :  { %v1559_v11 = vpop.eup %1558  ;;  %v474_v12 = vadd.f32 1e-12, %v472_v10 }
 0x6ff   :  { %v476_v14 = vmul.f32 %v1559_v11, %v473_v8  ;;  %vm482_vm11 = vweird.f32 %v1559_v11 }
 0x700   :  { %1560 = vrsqrt.f32 %v474_v12  ;;  %vm483_vm13 = vmor %vm481_vm12, %vm482_vm11  ;;  %vm491_vm15 = vweird.f32 %v474_v12 }
 0x701   :  { %v477_v15 = vmul.f32 %v1559_v11, %v476_v14 }
 0x703   :  { %v478_v16 = vmul.f32 0.5, %v477_v15 }
 0x705   :  { %v479_v17 = vsub.f32 1.5, %v478_v16 }
 0x706   :  { %v1561_v19 = vpop.eup %1560 }
 0x707   :  { %v480_v20 = vmul.f32 %v1559_v11, %v479_v17  ;;  %v486_v21 = vmul.f32 %v1561_v19, %v474_v12  ;;  %vm492_vm14 = vweird.f32 %v1561_v19 }
 0x708   :  { %vm493_vm0 = vmor %vm491_vm15, %vm492_vm14 }
 0x709   :  { %v484_v23 = vsel %vm483_vm13, %v1559_v11, %v480_v20  ;;  %v487_v51 = vmul.f32 %v1561_v19, %v486_v21 }
 0x70a   :  { %v495_v52 = vmul.f32 %v484_v23, %v461_v60 }
 0x70b   :  { %v488_v24 = vmul.f32 0.5, %v487_v51 }
 0x70c   :  { %v498_v49 = vmul.f32 %v1518_v22, %v495_v52  ;;  %v1920_v52 = vld [vmem:[%s2221_s5 + $0x70] sm:$0xff] }
 0x70d   :  { %v489_v50 = vsub.f32 1.5, %v488_v24  ;;  %675 = vmatpush.msrb.mxu2 %v1920_v52  ;;  %v1932_v24 = vld [vmem:[%s2221_s5 + $0x50] sm:$0xff] }
 0x70e   :  { %v501_v53 = vadd.f32 %v1519_v54, %v498_v49  ;;  %v1938_v49 = vld [vmem:[%s2221_s5 + $0x40] sm:$0xff] }
 0x70f   :  { %v490_v25 = vmul.f32 %v1561_v19, %v489_v50 }
 0x710   :  { %1397 = vmatmul.msk.f32.vlgmr.msrb.gmra.mxu3 %vm94_vm2, %v501_v53 }
 0x711   :  { %v494_v26 = vsel %vm493_vm0, %v1561_v19, %v490_v25 }
 0x712   :  { %v496_v27 = vmul.f32 %v494_v26, %v462_v0 }
 0x714   :  { %v499_v28 = vmul.f32 %v1518_v22, %v496_v27 }
 0x716   :  { %v502_v29 = vadd.f32 %v1519_v54, %v499_v28  ;;  %v1926_v54 = vld [vmem:[%s2221_s5 + $0x60] sm:$0xff] }
 0x717   :  { %676 = vmatpush.msrb.mxu2 %v1926_v54  ;;  %v1484_v50 = vpack.i.bf16 %v1926_v54, %v1920_v52 }
 0x718   :  { %1398 = vmatmul.msk.f32.gmra.mxu3 %vm94_vm2, %v502_v29 }
 0x719   :  { %677 = vmatpush.msrb.mxu2 %v1932_v24 }
 0x71b   :  { %678 = vmatpush.msrb.mxu2 %v1938_v49 }
 0x793   :  { %v528_v42 = vpop.f32.mrf.mxu3 }
 0x794   :  { %v529_v43 = vadd.f32 %v1520_v41, %v528_v42  ;;  %v1522_v42 = vld [vmem:[%s2220_s4 + $0x8] ss:$0 sm:$0xff] }
 0x796   :  { %v536_v44 = vmul.f32 0.044715, %v529_v43  ;;  %v534_v63 = vmul.f32 0.5, %v529_v43 }
 0x798   :  { %v538_v45 = vmul.f32 %v536_v44, %v529_v43 }
 0x79a   :  { %v540_v46 = vmul.f32 %v538_v45, %v529_v43 }
 0x79b   :  { %v531_v47 = vpop.f32.mrf.mxu3 }
 0x79c   :  { %v542_v48 = vadd.f32 %v540_v46, %v529_v43  ;;  %v532_v55 = vadd.f32 %v1520_v41, %v531_v47  ;;  %v1523_v46 = vld [vmem:[%s2220_s4 + $0x9] ss:$0 sm:$0xff] }
 0x79e   :  { %v544_v56 = vmul.f32 0.7978846, %v542_v48  ;;  %v537_v57 = vmul.f32 0.044715, %v532_v55  ;;  %v535_v2 = vmul.f32 0.5, %v532_v55 }
 0x7a0   :  { %1562 = vtanh.f32 %v544_v56  ;;  %v539_v58 = vmul.f32 %v537_v57, %v532_v55 }
 0x7a2   :  { %v541_v59 = vmul.f32 %v539_v58, %v532_v55 }
 0x7a4   :  { %v543_v60 = vadd.f32 %v541_v59, %v532_v55 }
 0x7a6   :  { %v1563_v61 = vpop.eup %1562  ;;  %v545_v62 = vmul.f32 0.7978846, %v543_v60 }
 0x7a7   :  { %v548_v13 = vadd.f32 1.0, %v1563_v61 }
 0x7a8   :  { %1564 = vtanh.f32 %v545_v62  ;;  %v1524_v62 = vld [vmem:[%s2220_s4 + $0xa] ss:$0 sm:$0xff] }
 0x7a9   :  { %v550_v0 = vmul.f32 %v548_v13, %v534_v63 }
 0x7ab   :  { %1399 = vmatmul.msk.f32.vlgmr.msra.gmra.mxu1 %vm562_vm1, %v550_v0 }
 0x7ae   :  { %v1565_v1 = vpop.eup %1564 }
 0x7af   :  { %v549_v18 = vadd.f32 1.0, %v1565_v1 }
 0x7b1   :  { %v551_v3 = vmul.f32 %v549_v18, %v535_v2 }
 0x7b3   :  { %1400 = vmatmul.msk.f32.gmra.mxu1 %vm562_vm1, %v551_v3 }
 0x828   :  { %v586_v5 = vpop.f32.mrf.mxu1 }
 0x829   :  { %v587_v6 = vadd.f32 %v1521_v4, %v586_v5 }
 0x82b   :  { %v592_v7 = vadd.f32 %v587_v6, %v501_v53  ;;  %v1489_v53 = vpack.i.bf16 %v1938_v49, %v1932_v24 }
 0x82d   :  { %v596_v8 = vsel %vm94_vm2, %v592_v7, 0.0 }
 0x82e   :  { %597 = vadd.xlane.f32.xlu2 %v596_v8 }
 0x830   :  { %v589_v9 = vpop.f32.mrf.mxu1 }
 0x831   :  { %v590_v10 = vadd.f32 %v1521_v4, %v589_v9 }
 0x833   :  { %v593_v11 = vadd.f32 %v590_v10, %v502_v29 }
 0x835   :  { %v599_v12 = vsel %vm94_vm2, %v593_v11, 0.0 }
 0x836   :  { %600 = vadd.xlane.f32.xlu1 %v599_v12 }
 0x8a1   :  { %v598_v14 = vpop.xlane.xlu2 %597 }
 0x8a2   :  { %v602_v15 = vmul.f32 %v598_v14, %v1737_v38 }
 0x8a4   :  { %v604_v16 = vsub.f32 %v592_v7, %v602_v15 }
 0x8a6   :  { %v606_v17 = vmul.f32 %v604_v16, %v604_v16 }
 0x8a8   :  { %v608_v19 = vsel %vm94_vm2, %v606_v17, 0.0 }
 0x8a9   :  { %609 = vadd.xlane.f32.xlu0 %v608_v19  ;;  %v601_v20 = vpop.xlane.xlu1 %600 }
 0x8aa   :  { %v603_v21 = vmul.f32 %v601_v20, %v1737_v38 }
 0x8ac   :  { %v605_v22 = vsub.f32 %v593_v11, %v603_v21 }
 0x8ae   :  { %v607_v23 = vmul.f32 %v605_v22, %v605_v22 }
 0x8b0   :  { %v611_v51 = vsel %vm94_vm2, %v607_v23, 0.0 }
 0x8b1   :  { %612 = vadd.xlane.f32.xlu2 %v611_v51 }
 0x91c   :  { %v610_v25 = vpop.xlane.xlu0 %609 }
 0x91d   :  { %v614_v26 = vmul.f32 %v610_v25, %v1737_v38 }
 0x91f   :  { %v616_v27 = vadd.f32 1e-12, %v614_v26 }
 0x921   :  { %1566 = vrsqrt.f32 %v616_v27  ;;  %vm624_vm4 = vweird.f32 %v616_v27 }
 0x924   :  { %v613_v28 = vpop.xlane.xlu2 %612 }
 0x925   :  { %v615_v29 = vmul.f32 %v613_v28, %v1737_v38 }
 0x927   :  { %v1567_v30 = vpop.eup %1566  ;;  %v617_v32 = vadd.f32 1e-12, %v615_v29 }
 0x928   :  { %v619_v33 = vmul.f32 %v1567_v30, %v616_v27  ;;  %vm625_vm3 = vweird.f32 %v1567_v30 }
 0x929   :  { %1568 = vrsqrt.f32 %v617_v32  ;;  %vm626_vm5 = vmor %vm624_vm4, %vm625_vm3  ;;  %vm634_vm7 = vweird.f32 %v617_v32 }
 0x92a   :  { %v620_v34 = vmul.f32 %v1567_v30, %v619_v33 }
 0x92c   :  { %v621_v35 = vmul.f32 0.5, %v620_v34 }
 0x92e   :  { %v622_v37 = vsub.f32 1.5, %v621_v35 }
 0x92f   :  { %v1569_v39 = vpop.eup %1568 }
 0x930   :  { %v623_v40 = vmul.f32 %v1567_v30, %v622_v37  ;;  %v629_v41 = vmul.f32 %v1569_v39, %v617_v32  ;;  %vm635_vm6 = vweird.f32 %v1569_v39 }
 0x931   :  { %vm636_vm8 = vmor %vm634_vm7, %vm635_vm6  ;;  %vm1205_vm7 = vcmask 785408  }
 0x932   :  { %v627_v43 = vsel %vm626_vm5, %v1567_v30, %v623_v40  ;;  %v630_v44 = vmul.f32 %v1569_v39, %v629_v41 }
 0x933   :  { %v638_v45 = vmul.f32 %v627_v43, %v604_v16 }
 0x934   :  { %v631_v47 = vmul.f32 0.5, %v630_v44 }
 0x935   :  { %v641_v48 = vmul.f32 %v1522_v42, %v638_v45 }
 0x936   :  { %v632_v55 = vsub.f32 1.5, %v631_v47 }
 0x937   :  { %v1953_v56 = vadd.f32 %v1523_v46, %v641_v48 }
 0x938   :  { %v633_v57 = vmul.f32 %v1569_v39, %v632_v55 }
 0x939   :  { %1409 = vmatmul.msk.f32.vlgmr.msrb.gmra.mxu2 %vm94_vm2, %v1953_v56 }
 0x93a   :  { %v637_v58 = vsel %vm636_vm8, %v1569_v39, %v633_v57 }
 0x93b   :  { %v639_v59 = vmul.f32 %v637_v58, %v605_v22 }
 0x93d   :  { %v642_v60 = vmul.f32 %v1522_v42, %v639_v59 }
 0x93f   :  { %v1957_v61 = vadd.f32 %v1523_v46, %v642_v60 }
 0x941   :  { %1410 = vmatmul.msk.f32.gmra.mxu2 %vm94_vm2, %v1957_v61 }
 0x9bc   :  { %v680_v63 = vpop.f32.mrf.mxu2 }
 0x9bd   :  { %v681_v13 = vadd.f32 %v1524_v62, %v680_v63 }
 0x9bf   :  { %784 = vrot.lane.b32.xlu2 %v681_v13, %s1614_s24  ;;  %788 = vrot.lane.b32.xlu0 %v681_v13, %s1613_s23 }
 0x9c4   :  { %v683_v0 = vpop.f32.mrf.mxu2 }
 0x9c5   :  { %v684_v1 = vadd.f32 %v1524_v62, %v683_v0 }
 0x9c7   :  { %790 = vrot.lane.b32.xlu1 %v684_v1, %s1613_s23  ;;  %688 = vrot.lane.b32.xlu2 %v681_v13, %s1615_s25  ;;  %v1474_v25 = vpack.i.bf16 %v681_v13, %v684_v1 }
 0x9c8   :  { %786 = vrot.lane.b32.xlu0 %v684_v1, %s1614_s24 }
 0x9cf   :  { %690 = vrot.lane.b32.xlu1 %v684_v1, %s1615_s25 }
 0xa19   :  { %v785_v18 = vpop.permute.xlu2 %784 }
 0xa21   :  { %v689_v5 = vpop.permute.xlu2 %688 }
 0xa31   :  { %v789_v3 = vpop.permute.xlu0 %788 }
 0xa39   :  { %v791_v2 = vpop.permute.xlu1 %790 }
 0xa3a   :  { %1417 = vmatpush.xpose.msk.msrb.mxu1 %vm199_vm10, %v791_v2  ;;  %v787_v6 = vpop.permute.xlu0 %786 }
 0xa3e   :  { %1418 = vmatpush.xpose.msk.msrb.mxu1 %vm199_vm10, %v789_v3 }
 0xa41   :  { %v691_v4 = vpop.permute.xlu1 %690  ;;  %1419 = vmatmul.msk.f32.vlgmr.msrb.gmra.mxu1 %vm199_vm10, %v785_v18 }
 0xa42   :  { %1411 = vmatpush.xpose.msk.msrb.mxu0 %vm199_vm10, %v691_v4 }
 0xa46   :  { %1412 = vmatpush.xpose.msk.msrb.mxu0 %vm199_vm10, %v689_v5 }
 0xa49   :  { %1413 = vmatmul.msk.f32.vlgmr.msrb.gmra.mxu0 %vm199_vm10, %v681_v13  ;;  %1420 = vmatmul.msk.f32.gmra.mxu1 %vm199_vm10, %v787_v6 }
 0xa51   :  { %1414 = vmatmul.msk.f32.gmra.mxu0 %vm199_vm10, %v684_v1 }
 0xabe   :  { %v817_v7 = vpop.f32.mrf.mxu1 }
 0xabf   :  { %v823_v8 = vmul.f32 0.25, %v817_v7 }
 0xac1   :  { %v825_v9 = vadd.f32 %v823_v8, %v1807_v31 }
 0xac3   :  { %v827_v10 = vsel %vm199_vm10, %v825_v9, -inf }
 0xac4   :  { %828 = vmax.xlane.f32.xlu0 %v827_v10 }
 0xac6   :  { %v717_v11 = vpop.f32.mrf.mxu0  ;;  %v820_v12 = vpop.f32.mrf.mxu1 }
 0xac7   :  { %v723_v14 = vmul.f32 0.25, %v717_v11  ;;  %v824_v15 = vmul.f32 0.25, %v820_v12 }
 0xac9   :  { %v725_v16 = vadd.f32 %v723_v14, %v1807_v31  ;;  %v826_v17 = vadd.f32 %v824_v15, %v1814_v36 }
 0xacb   :  { %v727_v19 = vsel %vm199_vm10, %v725_v16, -inf  ;;  %v830_v20 = vsel %vm199_vm10, %v826_v17, -inf }
 0xacc   :  { %728 = vmax.xlane.f32.xlu2 %v727_v19  ;;  %831 = vmax.xlane.f32.xlu1 %v830_v20 }
 0xace   :  { %v720_v21 = vpop.f32.mrf.mxu0 }
 0xacf   :  { %v724_v22 = vmul.f32 0.25, %v720_v21 }
 0xad1   :  { %v726_v23 = vadd.f32 %v724_v22, %v1814_v36 }
 0xad3   :  { %v730_v51 = vsel %vm199_vm10, %v726_v23, -inf }
 0xad4   :  { %731 = vmax.xlane.f32.xlu0 %v730_v51 }
 0xae4   :  { %1475 = vrot.lane.b32.xlu2 %v1474_v25, %s1616_s1 }
 0xaec   :  { %1490 = vrot.lane.b32.xlu2 %v1489_v53, %s1618_s30 }
 0xb37   :  { %v829_v31 = vpop.xlane.xlu0 %828 }
 0xb38   :  { %v833_v26 = vsub.f32 %v825_v9, %v829_v31 }
 0xb3a   :  { %v835_v27 = vmul.f32 1.442695, %v833_v26 }
 0xb3c   :  { %1570 = vpow2.f32 %v835_v27 }
 0xb3f   :  { %v729_v28 = vpop.xlane.xlu2 %728  ;;  %v832_v29 = vpop.xlane.xlu1 %831 }
 0xb40   :  { %v733_v30 = vsub.f32 %v725_v16, %v729_v28  ;;  %v834_v32 = vsub.f32 %v826_v17, %v832_v29  ;;  %v1525_v16 = vld [vmem:[%s2220_s4 + $0xb] ss:$0 sm:$0xff] }
 0xb42   :  { %v1571_v36 = vpop.eup %1570  ;;  %v735_v33 = vmul.f32 1.442695, %v733_v30  ;;  %v837_v34 = vmul.f32 1.442695, %v834_v32 }
 0xb43   :  { %v839_v35 = vsel %vm199_vm10, %v1571_v36, 0.0 }
 0xb44   :  { %1572 = vpow2.f32 %v735_v33  ;;  %840 = vadd.xlane.f32.xlu1 %v839_v35  ;;  %v1404_v35 = vld [vmem:[%s2221_s5 + $0x58] sm:$0xff] }
 0xb45   :  { %1574 = vpow2.f32 %v837_v34  ;;  %v1406_v34 = vld [vmem:[%s2221_s5 + $0x68] sm:$0xff] }
 0xb47   :  { %v1476_v37 = vpop.permute.xlu2 %1475  ;;  %v732_v39 = vpop.xlane.xlu0 %731 }
 0xb48   :  { %v1477_v24 = vunpack.i.l.bf16 %v1476_v37  ;;  %v734_v49 = vsub.f32 %v726_v23, %v732_v39  ;;  %v1478_v40 = vunpack.i.h.bf16 %v1476_v37  ;;  %v1402_v37 = vld [vmem:[%s2221_s5 + $0x48] sm:$0xff] }
 0xb4a   :  { %v1573_v53 = vpop.eup %1572  ;;  %v737_v41 = vmul.f32 1.442695, %v734_v49  ;;  %875 = vmatpush.msra.mxu2 %v1477_v24 }
 0xb4b   :  { %v1575_v42 = vpop.eup %1574  ;;  %v739_v43 = vsel %vm199_vm10, %v1573_v53, 0.0 }
 0xb4c   :  { %1576 = vpow2.f32 %v737_v41  ;;  %876 = vmatpush.msra.mxu2 %v1478_v40  ;;  %v842_v44 = vsel %vm199_vm10, %v1575_v42, 0.0  ;;  %740 = vadd.xlane.f32.xlu1 %v739_v43 }
 0xb4d   :  { %843 = vadd.xlane.f32.xlu0 %v842_v44 }
 0xb4f   :  { %v1491_v6 = vpop.permute.xlu2 %1490 }
 0xb50   :  { %v1492_v7 = vunpack.i.l.bf16 %v1491_v6  ;;  %v1493_v8 = vunpack.i.h.bf16 %v1491_v6  ;;  %v1431_v6 = vld [vmem:[%s2223_s6 + $0x60] sm:$0xff] }
 0xb52   :  { %v1577_v45 = vpop.eup %1576 }
 0xb53   :  { %v742_v46 = vsel %vm199_vm10, %v1577_v45, 0.0 }
 0xb54   :  { %743 = vadd.xlane.f32.xlu1 %v742_v46 }
 0xb61   :  { %1480 = vrot.lane.b32.xlu0 %v1474_v25, %s1617_s2 }
 0xb6d   :  { %1485 = vrot.lane.b32.xlu1 %v1484_v50, %s1618_s30 }
 0xbb7   :  { %v841_v47 = vpop.xlane.xlu1 %840 }
 0xbb8   :  { %1578 = vrcp.f32 %v841_v47 }
 0xbbe   :  { %v1579_v48 = vpop.eup %1578 }
 0xbbf   :  { %v847_v55 = vmul.f32 %v1579_v48, %v1571_v36  ;;  %v741_v60 = vpop.xlane.xlu1 %740 }
 0xbc0   :  { %v844_v57 = vpop.xlane.xlu0 %843 }
 0xbc1   :  { %1580 = vrcp.f32 %v844_v57  ;;  %1421 = vmatmul.msk.f32.vlgmr.msra.gmra.mxu2 %vm199_vm10, %v847_v55  ;;  %v1526_v57 = vld [vmem:[%s2220_s4 + $0xc] ss:$0 sm:$0xff] }
 0xbc2   :  { %1582 = vrcp.f32 %v741_v60 }
 0xbc7   :  { %v1581_v58 = vpop.eup %1580  ;;  %v744_v62 = vpop.xlane.xlu1 %743 }
 0xbc8   :  { %v848_v59 = vmul.f32 %v1581_v58, %v1575_v42  ;;  %v1583_v13 = vpop.eup %1582  ;;  %1584 = vrcp.f32 %v744_v62  ;;  %v1527_v62 = vld [vmem:[%s2220_s4 + $0xd] ss:$0 sm:$0xff] }
 0xbc9   :  { %v747_v54 = vmul.f32 %v1583_v13, %v1573_v53 }
 0xbca   :  { %1422 = vmatmul.msk.f32.gmra.mxu2 %vm199_vm10, %v848_v59 }
 0xbce   :  { %v1585_v50 = vpop.eup %1584 }
 0xbcf   :  { %v748_v1 = vmul.f32 %v1585_v50, %v1577_v45 }
 0xbd3   :  { %v1481_v63 = vpop.permute.xlu0 %1480 }
 0xbd4   :  { %v1482_v0 = vunpack.i.l.bf16 %v1481_v63  ;;  %v1483_v52 = vunpack.i.h.bf16 %v1481_v63 }
 0xbd6   :  { %775 = vmatpush.msra.mxu3 %v1482_v0 }
 0xbd8   :  { %776 = vmatpush.msra.mxu3 %v1483_v52 }
 0xbd9   :  { %1415 = vmatmul.msk.f32.vlgmr.msra.gmra.mxu3 %vm199_vm10, %v747_v54 }
 0xbdf   :  { %v1486_v3 = vpop.permute.xlu1 %1485 }
 0xbe0   :  { %v1488_v4 = vunpack.i.h.bf16 %v1486_v3  ;;  %v1487_v5 = vunpack.i.l.bf16 %v1486_v3  ;;  %v1434_v3 = vld [vmem:[%s2223_s6 + $0x78] sm:$0xff] }
 0xbe1   :  { %1416 = vmatmul.msk.f32.gmra.mxu3 %vm199_vm10, %v748_v1  ;;  %1069 = vmatpush.msra.mxu1 %v1434_v3 }
 0xbe2   :  { %930 = vmatpush.msra.mxu0 %v1487_v5  ;;  %v1432_v5 = vld [vmem:[%s2223_s6 + $0x68] sm:$0xff] }
 0xbe4   :  { %931 = vmatpush.msra.mxu0 %v1488_v4  ;;  %v1433_v4 = vld [vmem:[%s2223_s6 + $0x70] sm:$0xff] }
 0xbe5   :  { %1070 = vmatpush.msra.mxu1 %v1433_v4 }
 0xbe6   :  { %932 = vmatpush.msra.mxu0 %v1492_v7  ;;  %v1430_v7 = vld [vmem:[%s2223_s6 + $0x58] sm:$0xff] }
 0xbe7   :  { %1071 = vmatpush.msra.mxu1 %v1432_v5  ;;  %v1139_v5 = vld [vmem:[%s2224_s7 + $0x8] sm:$0xff] }
 0xbe8   :  { %933 = vmatpush.msra.mxu0 %v1493_v8  ;;  %v1429_v8 = vld [vmem:[%s2223_s6 + $0x50] sm:$0xff] }
 0xbe9   :  { %1072 = vmatpush.msra.mxu1 %v1431_v6 }
 0xbeb   :  { %1073 = vmatpush.msra.mxu1 %v1430_v7 }
 0xbed   :  { %1074 = vmatpush.msra.mxu1 %v1429_v8 }
 0xc44   :  { %v878_v2 = vpop.f32.mrf.mxu2 }
 0xc45   :  { %886 = vrot.lane.b32.xlu0 %v878_v2, %s1619_s3 }
 0xc4d   :  { %v881_v18 = vpop.f32.mrf.mxu2 }
 0xc4e   :  { %888 = vrot.lane.b32.xlu2 %v881_v18, %s1619_s3 }
 0xc5c   :  { %v778_v9 = vpop.f32.mrf.mxu3 }
 0xc64   :  { %v781_v14 = vpop.f32.mrf.mxu3 }
 0xca8   :  { %v889_v12 = vpop.permute.xlu2 %888 }
 0xca9   :  { %v893_v15 = vsel %vm199_vm10, %v781_v14, %v889_v12 }
 0xcb7   :  { %v887_v10 = vpop.permute.xlu0 %886 }
 0xcb8   :  { %v892_v11 = vsel %vm199_vm10, %v778_v9, %v887_v10  ;;  %v1428_v9 = vld [vmem:[%s2223_s6 + $0x48] sm:$0xff]  ;;  %v1427_v10 = vld [vmem:[%s2223_s6 + $0x40] sm:$0xff] }
 0xcb9   :  { %1423 = vmatmul.msk.f32.vlgmr.msra.gmra.mxu0 %vm94_vm2, %v892_v11  ;;  %1075 = vmatpush.msra.mxu1 %v1428_v9  ;;  %v1528_v11 = vld [vmem:[%s2220_s4 + $0xe] ss:$0 sm:$0xff] }
 0xcbb   :  { %1076 = vmatpush.msra.mxu1 %v1427_v10 }
 0xcc1   :  { %1424 = vmatmul.msk.f32.gmra.mxu0 %vm94_vm2, %v893_v15 }
 0xd36   :  { %v935_v17 = vpop.f32.mrf.mxu0 }
 0xd37   :  { %v936_v19 = vadd.f32 %v1525_v16, %v935_v17 }
 0xd39   :  { %v941_v20 = vadd.f32 %v936_v19, %v1953_v56 }
 0xd3b   :  { %v945_v21 = vsel %vm94_vm2, %v941_v20, 0.0 }
 0xd3c   :  { %946 = vadd.xlane.f32.xlu0 %v945_v21 }
 0xd3e   :  { %v938_v22 = vpop.f32.mrf.mxu0 }
 0xd3f   :  { %v939_v23 = vadd.f32 %v1525_v16, %v938_v22 }
 0xd41   :  { %v942_v51 = vadd.f32 %v939_v23, %v1957_v61  ;;  %v1408_v61 = vld [vmem:[%s2221_s5 + $0x78] sm:$0xff] }
 0xd42   :  { %1015 = vmatpush.msrb.mxu3 %v1408_v61  ;;  %v1529_v61 = vld [vmem:[%s2220_s4 + $0xf] ss:$0 sm:$0xff] }
 0xd43   :  { %v948_v25 = vsel %vm94_vm2, %v942_v51, 0.0 }
 0xd44   :  { %949 = vadd.xlane.f32.xlu2 %v948_v25  ;;  %1016 = vmatpush.msrb.mxu3 %v1406_v34 }
 0xd46   :  { %1017 = vmatpush.msrb.mxu3 %v1404_v35 }
 0xd48   :  { %1018 = vmatpush.msrb.mxu3 %v1402_v37 }
 0xdaf   :  { %v947_v31 = vpop.xlane.xlu0 %946 }
 0xdb0   :  { %v951_v26 = vmul.f32 %v947_v31, %v1737_v38 }
 0xdb2   :  { %v953_v27 = vsub.f32 %v941_v20, %v951_v26 }
 0xdb4   :  { %v955_v28 = vmul.f32 %v953_v27, %v953_v27 }
 0xdb6   :  { %v957_v29 = vsel %vm94_vm2, %v955_v28, 0.0 }
 0xdb7   :  { %958 = vadd.xlane.f32.xlu1 %v957_v29  ;;  %v950_v30 = vpop.xlane.xlu2 %949 }
 0xdb8   :  { %v952_v56 = vmul.f32 %v950_v30, %v1737_v38 }
 0xdba   :  { %v954_v32 = vsub.f32 %v942_v51, %v952_v56 }
 0xdbc   :  { %v956_v36 = vmul.f32 %v954_v32, %v954_v32 }
 0xdbe   :  { %v960_v33 = vsel %vm94_vm2, %v956_v36, 0.0 }
 0xdbf   :  { %961 = vadd.xlane.f32.xlu0 %v960_v33 }
 0xe2a   :  { %v959_v39 = vpop.xlane.xlu1 %958 }
 0xe2b   :  { %v963_v24 = vmul.f32 %v959_v39, %v1737_v38 }
 0xe2d   :  { %v965_v49 = vadd.f32 1e-12, %v963_v24 }
 0xe2f   :  { %1586 = vrsqrt.f32 %v965_v49  ;;  %vm973_vm10 = vweird.f32 %v965_v49 }
 0xe32   :  { %v962_v53 = vpop.xlane.xlu0 %961 }
 0xe33   :  { %v964_v40 = vmul.f32 %v962_v53, %v1737_v38 }
 0xe35   :  { %v1587_v41 = vpop.eup %1586  ;;  %v966_v42 = vadd.f32 1e-12, %v964_v40 }
 0xe36   :  { %v968_v43 = vmul.f32 %v1587_v41, %v965_v49  ;;  %vm974_vm9 = vweird.f32 %v1587_v41 }
 0xe37   :  { %1588 = vrsqrt.f32 %v966_v42  ;;  %vm975_vm11 = vmor %vm973_vm10, %vm974_vm9  ;;  %vm983_vm13 = vweird.f32 %v966_v42 }
 0xe38   :  { %v969_v44 = vmul.f32 %v1587_v41, %v968_v43 }
 0xe3a   :  { %v970_v45 = vmul.f32 0.5, %v969_v44 }
 0xe3c   :  { %v971_v46 = vsub.f32 1.5, %v970_v45 }
 0xe3d   :  { %v1589_v47 = vpop.eup %1588 }
 0xe3e   :  { %v972_v48 = vmul.f32 %v1587_v41, %v971_v46  ;;  %v978_v55 = vmul.f32 %v1589_v47, %v966_v42  ;;  %vm984_vm12 = vweird.f32 %v1589_v47 }
 0xe3f   :  { %vm985_vm14 = vmor %vm983_vm13, %vm984_vm12 }
 0xe40   :  { %v976_v58 = vsel %vm975_vm11, %v1587_v41, %v972_v48  ;;  %v979_v59 = vmul.f32 %v1589_v47, %v978_v55 }
 0xe41   :  { %v987_v60 = vmul.f32 %v976_v58, %v953_v27  ;;  %v1144_v58 = vld [vmem:[%s2224_s7 + $0x30] sm:$0xff] }
 0xe42   :  { %v980_v63 = vmul.f32 0.5, %v979_v59  ;;  %1166 = vmatpush.msrb.mxu2 %v1144_v58  ;;  %v1142_v59 = vld [vmem:[%s2224_s7 + $0x20] sm:$0xff] }
 0xe43   :  { %v990_v13 = vmul.f32 %v1526_v57, %v987_v60  ;;  %v1140_v60 = vld [vmem:[%s2224_s7 + $0x10] sm:$0xff] }
 0xe44   :  { %v981_v0 = vsub.f32 1.5, %v980_v63  ;;  %1167 = vmatpush.msrb.mxu2 %v1142_v59  ;;  %v1143_v63 = vld [vmem:[%s2224_s7 + $0x28] sm:$0xff] }
 0xe45   :  { %v993_v52 = vadd.f32 %v1527_v62, %v990_v13  ;;  %v1141_v13 = vld [vmem:[%s2224_s7 + $0x18] sm:$0xff] }
 0xe46   :  { %v982_v54 = vmul.f32 %v1589_v47, %v981_v0  ;;  %1168 = vmatpush.msrb.mxu2 %v1140_v60  ;;  %v1499_v0 = vpack.i.bf16 %v1143_v63, %v1142_v59  ;;  %v1251_v63 = vld [vmem:[%s2225_s8 + $0x30] sm:$0xff] }
 0xe47   :  { %1425 = vmatmul.msk.f32.vlgmr.msrb.gmra.mxu3 %vm94_vm2, %v993_v52 }
 0xe48   :  { %v986_v50 = vsel %vm985_vm14, %v1589_v47, %v982_v54 }
 0xe49   :  { %v988_v1 = vmul.f32 %v986_v50, %v954_v32 }
 0xe4b   :  { %v991_v2 = vmul.f32 %v1526_v57, %v988_v1 }
 0xe4d   :  { %v994_v18 = vadd.f32 %v1527_v62, %v991_v2  ;;  %v1138_v62 = vld [vmem:[%s2224_s7] sm:$0xff]  ;;  %v1145_v2 = vld [vmem:[%s2224_s7 + $0x38] sm:$0xff] }
 0xe4e   :  { %1169 = vmatpush.msrb.mxu2 %v1138_v62  ;;  %v1509_v9 = vpack.i.bf16 %v1139_v5, %v1138_v62  ;;  %v1295_v5 = vld [vmem:[%s2226_s9 + $0x38] sm:$0xff] }
 0xe4f   :  { %1426 = vmatmul.msk.f32.gmra.mxu3 %vm94_vm2, %v994_v18  ;;  %1312 = vmatpush.msrb.mxu1 %v1295_v5 }
 0xeca   :  { %v1020_v12 = vpop.f32.mrf.mxu3 }
 0xecb   :  { %v1021_v14 = vadd.f32 %v1528_v11, %v1020_v12 }
 0xecd   :  { %v1028_v15 = vmul.f32 0.044715, %v1021_v14  ;;  %v1026_v28 = vmul.f32 0.5, %v1021_v14 }
 0xecf   :  { %v1030_v16 = vmul.f32 %v1028_v15, %v1021_v14 }
 0xed1   :  { %v1032_v17 = vmul.f32 %v1030_v16, %v1021_v14 }
 0xed2   :  { %v1023_v19 = vpop.f32.mrf.mxu3 }
 0xed3   :  { %v1034_v20 = vadd.f32 %v1032_v17, %v1021_v14  ;;  %v1024_v21 = vadd.f32 %v1528_v11, %v1023_v19 }
 0xed5   :  { %v1036_v22 = vmul.f32 0.7978846, %v1034_v20  ;;  %v1029_v23 = vmul.f32 0.044715, %v1024_v21  ;;  %v1027_v32 = vmul.f32 0.5, %v1024_v21 }
 0xed7   :  { %1590 = vtanh.f32 %v1036_v22  ;;  %v1031_v51 = vmul.f32 %v1029_v23, %v1024_v21 }
 0xed9   :  { %v1033_v25 = vmul.f32 %v1031_v51, %v1024_v21 }
 0xedb   :  { %v1035_v31 = vadd.f32 %v1033_v25, %v1024_v21  ;;  %v1531_v21 = vld [vmem:[%s2220_s4 + $0x11] ss:$0 sm:$0xff] }
 0xedd   :  { %v1591_v26 = vpop.eup %1590  ;;  %v1037_v27 = vmul.f32 0.7978846, %v1035_v31 }
 0xede   :  { %v1040_v29 = vadd.f32 1.0, %v1591_v26 }
 0xedf   :  { %1592 = vtanh.f32 %v1037_v27 }
 0xee0   :  { %v1042_v30 = vmul.f32 %v1040_v29, %v1026_v28 }
 0xee2   :  { %1435 = vmatmul.msk.f32.vlgmr.msra.gmra.mxu1 %vm562_vm1, %v1042_v30 }
 0xee5   :  { %v1593_v56 = vpop.eup %1592 }
 0xee6   :  { %v1041_v36 = vadd.f32 1.0, %v1593_v56 }
 0xee8   :  { %v1043_v33 = vmul.f32 %v1041_v36, %v1027_v32 }
 0xeea   :  { %1436 = vmatmul.msk.f32.gmra.mxu1 %vm562_vm1, %v1043_v33 }
 0xf5f   :  { %v1078_v34 = vpop.f32.mrf.mxu1 }
 0xf60   :  { %v1079_v35 = vadd.f32 %v1529_v61, %v1078_v34 }
 0xf62   :  { %v1084_v37 = vadd.f32 %v1079_v35, %v993_v52  ;;  %v1504_v52 = vpack.i.bf16 %v1141_v13, %v1140_v60  ;;  %v1252_v60 = vld [vmem:[%s2225_s8 + $0x38] sm:$0xff]  ;;  %v1250_v13 = vld [vmem:[%s2225_s8 + $0x28] sm:$0xff] }
 0xf64   :  { %v1088_v39 = vsel %vm94_vm2, %v1084_v37, 0.0 }
 0xf65   :  { %1089 = vadd.xlane.f32.xlu2 %v1088_v39 }
 0xf67   :  { %v1081_v24 = vpop.f32.mrf.mxu1 }
 0xf68   :  { %v1082_v49 = vadd.f32 %v1529_v61, %v1081_v24 }
 0xf6a   :  { %v1085_v53 = vadd.f32 %v1082_v49, %v994_v18  ;;  %v1494_v18 = vpack.i.bf16 %v1145_v2, %v1144_v58  ;;  %v1253_v58 = vld [vmem:[%s2225_s8 + $0x40] sm:$0xff] }
 0xf6c   :  { %v1091_v40 = vsel %vm94_vm2, %v1085_v53, 0.0 }
 0xf6d   :  { %1092 = vadd.xlane.f32.xlu0 %v1091_v40 }
 0xf81   :  { %1495 = vrot.lane.b32.xlu0 %v1494_v18, %s1615_s25  ;;  %v1247_v18 = vld [vmem:[%s2225_s8 + $0x10] sm:$0xff] }
 0xf89   :  { %1510 = vrot.lane.b32.xlu0 %v1509_v9, %s1615_s25  ;;  %v1291_v9 = vld [vmem:[%s2226_s9 + $0x18] sm:$0xff] }
 0xfd8   :  { %v1090_v41 = vpop.xlane.xlu2 %1089 }
 0xfd9   :  { %v1094_v42 = vmul.f32 %v1090_v41, %v1737_v38 }
 0xfdb   :  { %v1096_v43 = vsub.f32 %v1084_v37, %v1094_v42 }
 0xfdd   :  { %v1098_v44 = vmul.f32 %v1096_v43, %v1096_v43 }
 0xfdf   :  { %v1100_v45 = vsel %vm94_vm2, %v1098_v44, 0.0  ;;  %v1259_v44 = vld [vmem:[%s2225_s8 + $0x70] sm:$0xff] }
 0xfe0   :  { %v1093_v46 = vpop.xlane.xlu0 %1092  ;;  %1101 = vadd.xlane.f32.xlu1 %v1100_v45  ;;  %v1258_v45 = vld [vmem:[%s2225_s8 + $0x68] sm:$0xff] }
 0xfe1   :  { %v1095_v47 = vmul.f32 %v1093_v46, %v1737_v38  ;;  %v1257_v46 = vld [vmem:[%s2225_s8 + $0x60] sm:$0xff] }
 0xfe3   :  { %v1097_v48 = vsub.f32 %v1085_v53, %v1095_v47  ;;  %v1256_v47 = vld [vmem:[%s2225_s8 + $0x58] sm:$0xff] }
 0xfe5   :  { %v1099_v55 = vmul.f32 %v1097_v48, %v1097_v48 }
 0xfe7   :  { %v1103_v57 = vsel %vm94_vm2, %v1099_v55, 0.0  ;;  %v1254_v55 = vld [vmem:[%s2225_s8 + $0x48] sm:$0xff] }
 0xfe8   :  { %1104 = vadd.xlane.f32.xlu2 %v1103_v57  ;;  %v1532_v57 = vld [vmem:[%s2220_s4 + $0x12] ss:$0 sm:$0xff] }
 0xff3   :  { %v1496_v30 = vpop.permute.xlu0 %1495 }
 0xff4   :  { %v1498_v56 = vunpack.i.h.bf16 %v1496_v30  ;;  %v1497_v32 = vunpack.i.l.bf16 %v1496_v30 }
 0xff6   :  { %v1209_v36 = vsel %vm1205_vm7, %v1497_v32, %v1498_v56 }
 0xff7   :  { %1232 = vmatpush.msrb.mxu0 %v1209_v36 }
 0xff9   :  { %1500 = vrot.lane.b32.xlu1 %v1499_v0, %s1615_s25  ;;  %v1249_v0 = vld [vmem:[%s2225_s8 + $0x20] sm:$0xff] }
 0xffb   :  { %v1511_v37 = vpop.permute.xlu0 %1510 }
 0xffc   :  { %v1513_v49 = vunpack.i.h.bf16 %v1511_v37  ;;  %v1512_v53 = vunpack.i.l.bf16 %v1511_v37 }
 0xffe   :  { %v1206_v42 = vsel %vm1205_vm7, %v1512_v53, %v1513_v49 }
0x1000   :  { %1505 = vrot.lane.b32.xlu2 %v1504_v52, %s1615_s25 }
0x1053   :  { %v1102_v54 = vpop.xlane.xlu1 %1101 }
0x1054   :  { %v1106_v50 = vmul.f32 %v1102_v54, %v1737_v38  ;;  %v1248_v54 = vld [vmem:[%s2225_s8 + $0x18] sm:$0xff] }
0x1056   :  { %v1108_v1 = vadd.f32 1e-12, %v1106_v50 }
0x1058   :  { %1594 = vrsqrt.f32 %v1108_v1  ;;  %vm1116_vm0 = vweird.f32 %v1108_v1 }
0x105b   :  { %v1105_v3 = vpop.xlane.xlu2 %1104 }
0x105c   :  { %v1107_v4 = vmul.f32 %v1105_v3, %v1737_v38  ;;  %v1530_v38 = vld [vmem:[%s2220_s4 + $0x10] ss:$0 sm:$0xff]  ;;  %v1246_v3 = vld [vmem:[%s2225_s8 + $0x8] sm:$0xff] }
0x105e   :  { %v1595_v6 = vpop.eup %1594  ;;  %v1109_v7 = vadd.f32 1e-12, %v1107_v4  ;;  %v1245_v4 = vld [vmem:[%s2225_s8] sm:$0xff] }
0x105f   :  { %v1111_v8 = vmul.f32 %v1595_v6, %v1108_v1  ;;  %vm1117_vm15 = vweird.f32 %v1595_v6 }
0x1060   :  { %1596 = vrsqrt.f32 %v1109_v7  ;;  %vm1118_vm3 = vmor %vm1116_vm0, %vm1117_vm15  ;;  %vm1126_vm5 = vweird.f32 %v1109_v7 }
0x1061   :  { %v1112_v10 = vmul.f32 %v1595_v6, %v1111_v8  ;;  %v1292_v8 = vld [vmem:[%s2226_s9 + $0x20] sm:$0xff] }
0x1063   :  { %v1113_v11 = vmul.f32 0.5, %v1112_v10  ;;  %v1506_v35 = vpop.permute.xlu2 %1505  ;;  %v1533_v10 = vld [vmem:[%s2220_s4 + $0x13] ss:$0 sm:$0xff] }
0x1064   :  { %v1508_v39 = vunpack.i.h.bf16 %v1506_v35  ;;  %v1507_v24 = vunpack.i.l.bf16 %v1506_v35 }
0x1065   :  { %v1114_v12 = vsub.f32 1.5, %v1113_v11 }
0x1066   :  { %v1597_v14 = vpop.eup %1596  ;;  %v1207_v41 = vsel %vm1205_vm7, %v1507_v24, %v1508_v39 }
0x1067   :  { %v1115_v15 = vmul.f32 %v1595_v6, %v1114_v12  ;;  %v1121_v16 = vmul.f32 %v1597_v14, %v1109_v7  ;;  %vm1127_vm4 = vweird.f32 %v1597_v14  ;;  %v1293_v7 = vld [vmem:[%s2226_s9 + $0x28] sm:$0xff] }
0x1068   :  { %vm1128_vm6 = vmor %vm1126_vm5, %vm1127_vm4 }
0x1069   :  { %v1119_v17 = vsel %vm1118_vm3, %v1595_v6, %v1115_v15  ;;  %v1122_v19 = vmul.f32 %v1597_v14, %v1121_v16  ;;  %v1294_v6 = vld [vmem:[%s2226_s9 + $0x30] sm:$0xff] }
0x106a   :  { %v1130_v20 = vmul.f32 %v1119_v17, %v1096_v43  ;;  %v1260_v43 = vld [vmem:[%s2225_s8 + $0x78] sm:$0xff]  ;;  %1313 = vmatpush.msrb.mxu1 %v1294_v6  ;;  %v1290_v17 = vld [vmem:[%s2226_s9 + $0x10] sm:$0xff] }
0x106b   :  { %v1123_v22 = vmul.f32 0.5, %v1122_v19  ;;  %v1501_v33 = vpop.permute.xlu1 %1500  ;;  %1263 = vmatpush.msra.mxu3 %v1260_v43  ;;  %v1289_v19 = vld [vmem:[%s2226_s9 + $0x8] sm:$0xff] }
0x106c   :  { %v1133_v23 = vmul.f32 %v1530_v38, %v1130_v20  ;;  %v1503_v61 = vunpack.i.h.bf16 %v1501_v33  ;;  %v1502_v34 = vunpack.i.l.bf16 %v1501_v33  ;;  %1314 = vmatpush.msrb.mxu1 %v1293_v7  ;;  %v1288_v20 = vld [vmem:[%s2226_s9] sm:$0xff] }
0x106d   :  { %v1124_v51 = vsub.f32 1.5, %v1123_v22  ;;  %1264 = vmatpush.msra.mxu3 %v1259_v44 }
0x106e   :  { %v1136_v25 = vadd.f32 %v1531_v21, %v1133_v23  ;;  %v1208_v40 = vsel %vm1205_vm7, %v1502_v34, %v1503_v61  ;;  %1315 = vmatpush.msrb.mxu1 %v1292_v8 }
0x106f   :  { %v1125_v31 = vmul.f32 %v1597_v14, %v1124_v51  ;;  %1233 = vmatpush.msrb.mxu0 %v1208_v40  ;;  %1265 = vmatpush.msra.mxu3 %v1258_v45 }
0x1070   :  { %1437 = vmatmul.msk.f32.vlgmr.msrb.gmra.mxu2 %vm94_vm2, %v1136_v25  ;;  %1316 = vmatpush.msrb.mxu1 %v1291_v9 }
0x1071   :  { %v1129_v26 = vsel %vm1128_vm6, %v1597_v14, %v1125_v31  ;;  %1234 = vmatpush.msrb.mxu0 %v1207_v41  ;;  %1266 = vmatpush.msra.mxu3 %v1257_v46 }
0x1072   :  { %v1131_v27 = vmul.f32 %v1129_v26, %v1097_v48  ;;  %v1255_v48 = vld [vmem:[%s2225_s8 + $0x50] sm:$0xff]  ;;  %1317 = vmatpush.msrb.mxu1 %v1290_v17 }
0x1073   :  { %1235 = vmatpush.msrb.mxu0 %v1206_v42  ;;  %1267 = vmatpush.msra.mxu3 %v1256_v47 }
0x1074   :  { %v1134_v28 = vmul.f32 %v1530_v38, %v1131_v27  ;;  %1318 = vmatpush.msrb.mxu1 %v1289_v19  ;;  %v1535_v27 = vld [vmem:[%s2220_s4 + $0x15] ss:$0 sm:$0xff] }
0x1075   :  { %1268 = vmatpush.msra.mxu3 %v1255_v48 }
0x1076   :  { %v1137_v29 = vadd.f32 %v1531_v21, %v1134_v28  ;;  %1319 = vmatpush.msrb.mxu1 %v1288_v20  ;;  %v1534_v21 = vld [vmem:[%s2220_s4 + $0x14] ss:$0 sm:$0xff] }
0x1077   :  { %1269 = vmatpush.msra.mxu3 %v1254_v55 }
0x1078   :  { %1438 = vmatmul.msk.f32.gmra.mxu2 %vm94_vm2, %v1137_v29 }
0x1079   :  { %1270 = vmatpush.msra.mxu3 %v1253_v58 }
0x107b   :  { %1271 = vmatpush.msra.mxu3 %v1252_v60 }
0x107d   :  { %1272 = vmatpush.msra.mxu3 %v1251_v63 }
0x107f   :  { %1273 = vmatpush.msra.mxu3 %v1250_v13 }
0x1081   :  { %1274 = vmatpush.msra.mxu3 %v1249_v0 }
0x1083   :  { %1275 = vmatpush.msra.mxu3 %v1248_v54 }
0x1085   :  { %1276 = vmatpush.msra.mxu3 %v1247_v18 }
0x1087   :  { %1277 = vmatpush.msra.mxu3 %v1246_v3 }
0x1089   :  { %1278 = vmatpush.msra.mxu3 %v1245_v4 }
0x10f3   :  { %v1171_v59 = vpop.f32.mrf.mxu2 }
0x10f4   :  { %v1172_v62 = vadd.f32 %v1532_v57, %v1171_v59 }
0x10f6   :  { %1598 = vtanh.f32 %v1172_v62 }
0x10fb   :  { %v1174_v52 = vpop.f32.mrf.mxu2 }
0x10fc   :  { %v1599_v50 = vpop.eup %1598  ;;  %v1175_v1 = vadd.f32 %v1532_v57, %v1174_v52 }
0x10fd   :  { %1439 = vmatmul.msk.f32.vlgmr.msrb.gmra.mxu0 %vm94_vm2, %v1599_v50 }
0x10fe   :  { %1600 = vtanh.f32 %v1175_v1 }
0x1104   :  { %v1601_v2 = vpop.eup %1600 }
0x1105   :  { %1440 = vmatmul.msk.f32.gmra.mxu0 %vm94_vm2, %v1601_v2 }
0x117a   :  { %v1237_v11 = vpop.f32.mrf.mxu0 }
0x117b   :  { %v1238_v12 = vadd.f32 %v1533_v10, %v1237_v11 }
0x117d   :  { %v1243_v14 = vmax.f32 %v1238_v12, 0.0 }
0x117f   :  { %1279 = vmatmul.f32.vlgmr.msra.gmra.mxu3 %v1243_v14 }
0x1182   :  { %v1240_v15 = vpop.f32.mrf.mxu0 }
0x1183   :  { %v1241_v16 = vadd.f32 %v1533_v10, %v1240_v15 }
0x1185   :  { %v1244_v38 = vmax.f32 %v1241_v16, 0.0 }
0x1187   :  { %1282 = vmatmul.f32.gmra.mxu3 %v1244_v38 }
0x1202   :  { %v1280_v22 = vpop.f32.mrf.mxu3 }
0x1203   :  { %v1281_v23 = vadd.f32 %v1534_v21, %v1280_v22 }
0x1205   :  { %v1286_v51 = vmax.f32 %v1281_v23, 0.0 }
0x1207   :  { %1441 = vmatmul.msk.f32.vlgmr.msrb.gmra.mxu1 %vm562_vm1, %v1286_v51 }
0x120a   :  { %v1283_v25 = vpop.f32.mrf.mxu3 }
0x120b   :  { %v1284_v31 = vadd.f32 %v1534_v21, %v1283_v25 }
0x120d   :  { %v1287_v26 = vmax.f32 %v1284_v31, 0.0 }
0x120f   :  { %1442 = vmatmul.msk.f32.gmra.mxu1 %vm562_vm1, %v1287_v26 }
0x1284   :  { %v1321_v28 = vpop.f32.mrf.mxu1 }
0x1285   :  { %v1322_v29 = vadd.f32 %v1535_v27, %v1321_v28 }
0x1287   :  { %1327 = vmax.xlane.f32.xlu2 %v1322_v29 }
0x128c   :  { %v1324_v30 = vpop.f32.mrf.mxu1 }
0x128d   :  { %v1325_v56 = vadd.f32 %v1535_v27, %v1324_v30 }
0x128f   :  { %1329 = vmax.xlane.f32.xlu1 %v1325_v56 }
0x12fa   :  { %v1328_v32 = vpop.xlane.xlu2 %1327 }
0x12fb   :  { %v1331_v36 = vsub.f32 %v1322_v29, %v1328_v32 }
0x12fd   :  { %v1333_v33 = vmul.f32 1.442695, %v1331_v36 }
0x12ff   :  { %1602 = vpow2.f32 %v1333_v33 }
0x1302   :  { %v1330_v61 = vpop.xlane.xlu1 %1329 }
0x1303   :  { %v1332_v34 = vsub.f32 %v1325_v56, %v1330_v61 }
0x1305   :  { %v1603_v35 = vpop.eup %1602  ;;  %v1335_v37 = vmul.f32 1.442695, %v1332_v34 }
0x1306   :  { %1337 = vadd.xlane.f32.xlu0 %v1603_v35 }
0x1307   :  { %1604 = vpow2.f32 %v1335_v37 }
0x130d   :  { %v1605_v39 = vpop.eup %1604 }
0x130e   :  { %1339 = vadd.xlane.f32.xlu2 %v1605_v39 }
0x1379   :  { %v1338_v24 = vpop.xlane.xlu0 %1337 }
0x137a   :  { %1606 = vrcp.f32 %v1338_v24  ;;  %v1352_v42 = vand.u32 2147483648, %v1338_v24  ;;  %v1350_v44 = vand.u32 2147483647, %v1338_v24  ;;  %vm1346_vm1 = vweird.f32 %v1338_v24 }
0x137c   :  { %v1353_v47 = vor.u32 1.1754944e-38, %v1352_v42  ;;  %vm1351_vm9 = vcmp.eq.f32.partialorder %v1350_v44, 8.507059e+37 }
0x1380   :  { %v1607_v49 = vpop.eup %1606 }
0x1381   :  { %v1342_v53 = vmul.f32 %v1607_v49, %v1338_v24  ;;  %v1340_v40 = vpop.xlane.xlu2 %1339  ;;  %vm1347_vm2 = vweird.f32 %v1607_v49 }
0x1382   :  { %1608 = vrcp.f32 %v1340_v40  ;;  %vm1348_vm8 = vmor %vm1346_vm1, %vm1347_vm2  ;;  %v1367_v60 = vand.u32 2147483648, %v1340_v40  ;;  %v1365_v63 = vand.u32 2147483647, %v1340_v40  ;;  %vm1361_vm11 = vweird.f32 %v1340_v40 }
0x1383   :  { %v1343_v41 = vsub.f32 1.0, %v1342_v53 }
0x1384   :  { %v1368_v0 = vor.u32 1.1754944e-38, %v1367_v60  ;;  %vm1366_vm13 = vcmp.eq.f32.partialorder %v1365_v63, 8.507059e+37 }
0x1385   :  { %v1344_v43 = vmul.f32 %v1607_v49, %v1343_v41 }
0x1387   :  { %v1345_v45 = vadd.f32 %v1607_v49, %v1344_v43 }
0x1388   :  { %v1609_v46 = vpop.eup %1608 }
0x1389   :  { %v1349_v48 = vsel %vm1348_vm8, %v1607_v49, %v1345_v45  ;;  %v1357_v55 = vmul.f32 %v1609_v46, %v1340_v40  ;;  %vm1362_vm10 = vweird.f32 %v1609_v46 }
0x138a   :  { %v1354_v57 = vsel %vm1351_vm9, %v1353_v47, %v1349_v48  ;;  %vm1363_vm12 = vmor %vm1361_vm11, %vm1362_vm10 }
0x138b   :  { %v1355_v58 = vmul.f32 %v1603_v35, %v1354_v57  ;;  %v1358_v59 = vsub.f32 1.0, %v1357_v55 }
0x138d   :  { %1371 = vst [vmem:[%s2227_s10] sm:$0xff] %v1355_v58  ;;  %v1359_v62 = vmul.f32 %v1609_v46, %v1358_v59 }
0x138f   :  { %v1360_v13 = vadd.f32 %v1609_v46, %v1359_v62 }
0x1391   :  { %v1364_v52 = vsel %vm1363_vm12, %v1609_v46, %v1360_v13 }
0x1392   :  { %v1369_v54 = vsel %vm1366_vm13, %v1368_v0, %v1364_v52 }
0x1393   :  { %v1370_v50 = vmul.f32 %v1605_v39, %v1369_v54 }
0x1395   :  { %1372 = vst [vmem:[%s2227_s10 + $0x8] sm:$0xff] %v1370_v50 }

</bundles_post_ra>
